<compile_context>
chip_gen: v5e
topology: v5e:2x2
jax: 0.10.0
libtpu: 0.0.40
codegen_flags: <defaults>
</compile_context>

<pallas_src>
import jax
import jax.numpy as jnp
from jax import lax
from jax.experimental import pallas as pl
from jax.experimental.pallas import tpu as pltpu


def _make_dense_block_kernel(num_convs, in_channels, out_channels, N, H, W, eps):
    """Build the fused DenseBlock kernel for static shapes.

    Kernel ref order (as passed by pallas_call):
      x_ref                                   (C0, NHW)       block input
      mask_ref                                (9, NHW)        per-tap validity
      [gamma_l, beta_l, wstack_l, bias_l] * L per-layer parameters
      o_ref                                   (C_total, NHW)  output (resident)
    """
    NHW = N * H * W
    taps = [(dy, dx) for dy in (-1, 0, 1) for dx in (-1, 0, 1)]

    def kernel(*refs):
        x_ref = refs[0]
        mask_ref = refs[1]
        o_ref = refs[2 + 4 * num_convs]

        # Seed the VMEM-resident concat buffer with the block input.  Every
        # channel row of o_ref is written exactly once; the full buffer goes
        # back to HBM once when the kernel finishes.
        o_ref[0:in_channels, :] = x_ref[...]

        inv_npix = 1.0 / float(NHW)

        for l in range(num_convs):
            g_ref, b_ref, w_ref, bias_ref = refs[2 + 4 * l: 2 + 4 * (l + 1)]
            c_in = in_channels + l * out_channels

            # ---- BatchNorm2d (training-mode batch stats, biased variance) --
            # One traversal: per-row (per-channel) sum and sum-of-squares.
            a = o_ref[0:c_in, :]                                 # (c_in, NHW)
            s = jnp.sum(a, axis=1, keepdims=True)                # (c_in, 1)
            ss = jnp.sum(a * a, axis=1, keepdims=True)           # (c_in, 1)
            mean = s * inv_npix
            var = jnp.maximum(ss * inv_npix - mean * mean, 0.0)
            scale = g_ref[...] * lax.rsqrt(var + eps)            # (c_in, 1)
            shift = b_ref[...] - mean * scale

            # ---- BN affine + ReLU (lane-dense, stays in registers/VMEM) ----
            y = jnp.maximum(a * scale + shift, 0.0)              # (c_in, NHW)

            # ---- 3x3 "same" conv as 9 accumulated MXU dots -----------------
            # out[o, p] = sum_{dy,dx,i} W[dy,dx,o,i] * y[i, p + dy*W + dx]
            # with out-of-image source pixels masked to zero (= the zero pad).
            acc = jnp.zeros((out_channels, NHW), jnp.float32)
            for t, (dy, dx) in enumerate(taps):
                offset = dy * W + dx
                if offset == 0:
                    slab = y                                     # centre tap
                else:
                    rolled = pltpu.roll(y, (-offset) % NHW, 1)   # XLU lane roll
                    slab = rolled * mask_ref[t:t + 1, :]         # zero padding
                acc = acc + jnp.dot(w_ref[t], slab,              # (c_out, NHW)
                                    preferred_element_type=jnp.float32)
            acc = acc + bias_ref[...]

            # Dense concatenation: append this layer's features to the
            # resident buffer (lane-dense, unmasked store).
            o_ref[c_in:c_in + out_channels, :] = acc.astype(o_ref.dtype)

    return kernel


def _build_tap_masks(N, H, W):
    """(9, N*H*W) f32 masks: 1 where the 3x3 tap's source pixel is in-image."""
    ys = jnp.arange(H)[:, None]
    xs = jnp.arange(W)[None, :]
    rows = []
    for dy in (-1, 0, 1):
        for dx in (-1, 0, 1):
            valid = ((ys + dy >= 0) & (ys + dy < H) &
                     (xs + dx >= 0) & (xs + dx < W))
            m_flat = valid.astype(jnp.float32).reshape(-1)       # (H*W,)
            rows.append(jnp.tile(m_flat, N))                     # (N*H*W,)
    return jnp.stack(rows, axis=0)                               # (9, NHW)


def dense_block_pallas(x_nchw, params, eps=1e-5):
    """Fused DenseBlock forward.  x_nchw: (N, C0, H, W) -> (N, C_total, H, W)."""
    x_nchw = x_nchw.astype(jnp.float32)
    N, c0, H, W = x_nchw.shape
    NHW = N * H * W
    num_convs = len(params)
    c_out = params[0][3].shape[0]
    c_total = c0 + num_convs * c_out

    # NCHW -> (C0, N*H*W): spatial on the lane axis.
    x_cm = jnp.transpose(x_nchw, (1, 0, 2, 3)).reshape(c0, NHW)
    mask = _build_tap_masks(N, H, W)

    inputs = [x_cm, mask]
    in_specs = [pl.BlockSpec((c0, NHW), lambda i: (0, 0)),
                pl.BlockSpec((9, NHW), lambda i: (0, 0))]

    flops = 0
    param_bytes = 0
    for (gamma, beta, w_hwio, bias) in params:
        c_in = gamma.shape[0]
        # HWIO (3,3,c_in,c_out) -> per-tap weight-as-LHS stack (9, c_out, c_in);
        # tap index t = (dy+1)*3 + (dx+1), matching the kernel's tap order.
        wstack = jnp.transpose(w_hwio.astype(jnp.float32),
                               (0, 1, 3, 2)).reshape(9, c_out, c_in)
        inputs += [gamma.astype(jnp.float32)[:, None],
                   beta.astype(jnp.float32)[:, None],
                   wstack,
                   bias.astype(jnp.float32)[:, None]]
        in_specs += [
            pl.BlockSpec((c_in, 1), lambda i: (0, 0)),
            pl.BlockSpec((c_in, 1), lambda i: (0, 0)),
            pl.BlockSpec((9, c_out, c_in), lambda i: (0, 0, 0)),
            pl.BlockSpec((c_out, 1), lambda i: (0, 0)),
        ]
        flops += 2 * NHW * 9 * c_in * c_out + 8 * NHW * c_in
        param_bytes += 4 * (2 * c_in + 9 * c_in * c_out + c_out)

    cost = pl.CostEstimate(
        flops=int(flops),
        transcendentals=int(sum(c0 + l * c_out for l in range(num_convs))),
        bytes_accessed=int(4 * (c0 * NHW + 9 * NHW + c_total * NHW) + param_bytes),
    )

    kernel = _make_dense_block_kernel(num_convs, c0, c_out, N, H, W, eps)
    out_cm = pl.pallas_call(
        kernel,
        out_shape=jax.ShapeDtypeStruct((c_total, NHW), jnp.float32),
        grid=(1,),
        in_specs=in_specs,
        out_specs=pl.BlockSpec((c_total, NHW), lambda i: (0, 0)),
        compiler_params=pltpu.CompilerParams(
            dimension_semantics=("arbitrary",)),
        cost_estimate=cost,
    )(*inputs)

    # (C_total, N*H*W) -> NCHW
    return jnp.transpose(out_cm.reshape(c_total, N, H, W), (1, 0, 2, 3))


def init_dense_block_params(key, num_convs, in_channels, out_channels):
    """Deterministic synthetic parameters (shapes match the PyTorch module)."""
    params = []
    for i in range(num_convs):
        cin = in_channels + i * out_channels
        key, k1, k2, k3, k4 = jax.random.split(key, 5)
        gamma = 1.0 + 0.1 * jax.random.normal(k1, (cin,), jnp.float32)
        beta = 0.1 * jax.random.normal(k2, (cin,), jnp.float32)
        w = 0.1 * jax.random.normal(k3, (3, 3, cin, out_channels), jnp.float32)
        bias = 0.1 * jax.random.normal(k4, (out_channels,), jnp.float32)
        params.append((gamma, beta, w, bias))
    return params


def dense_block_reference(x_nchw, params, eps=1e-5):
    """Pure-JAX reference for correctness checking."""
    x = jnp.transpose(x_nchw, (0, 2, 3, 1)).astype(jnp.float32)
    for (gamma, beta, w, bias) in params:
        mean = jnp.mean(x, axis=(0, 1, 2))
        var = jnp.mean((x - mean) ** 2, axis=(0, 1, 2))  # biased, like BN fwd
        xn = (x - mean) / jnp.sqrt(var + eps) * gamma + beta
        xr = jnp.maximum(xn, 0.0)
        y = lax.conv_general_dilated(
            xr, w, window_strides=(1, 1), padding="SAME",
            dimension_numbers=("NHWC", "HWIO", "NHWC")) + bias
        x = jnp.concatenate([x, y], axis=-1)
    return jnp.transpose(x, (0, 3, 1, 2))


if __name__ == "__main__":
    # DenseBlock(num_convs=2, in_channels=4, out_channels=8) on x (2, 4, 16, 16).
    num_convs, in_channels, out_channels = 2, 4, 8
    N, H, W = 2, 16, 16

    key = jax.random.PRNGKey(0)
    key, kx = jax.random.split(key)
    x = jax.random.normal(kx, (N, in_channels, H, W), jnp.float32)

    params = init_dense_block_params(key, num_convs, in_channels, out_channels)

    out = dense_block_pallas(x, params)
    out = jax.block_until_ready(out)

    expected_channels = in_channels + num_convs * out_channels
    assert out.shape == (N, expected_channels, H, W), out.shape

    ref = jax.block_until_ready(dense_block_reference(x, params))
    if not jnp.allclose(out, ref, atol=2e-4, rtol=2e-4):
        raise AssertionError("Pallas DenseBlock does not match reference")

    print("KERNEL_OK")
</pallas_src>

<mosaic_0001>
module attributes {stable_mosaic.version = 11 : i64} {
  func.func @kernel(%arg0: i32, %arg1: memref<4x512xf32, #tpu.memory_space<vmem>>, %arg2: memref<9x512xf32, #tpu.memory_space<vmem>>, %arg3: memref<4x1xf32, #tpu.memory_space<vmem>>, %arg4: memref<4x1xf32, #tpu.memory_space<vmem>>, %arg5: memref<9x8x4xf32, #tpu.memory_space<vmem>>, %arg6: memref<8x1xf32, #tpu.memory_space<vmem>>, %arg7: memref<12x1xf32, #tpu.memory_space<vmem>>, %arg8: memref<12x1xf32, #tpu.memory_space<vmem>>, %arg9: memref<9x8x12xf32, #tpu.memory_space<vmem>>, %arg10: memref<8x1xf32, #tpu.memory_space<vmem>>, %arg11: memref<20x512xf32, #tpu.memory_space<vmem>>) attributes {dimension_semantics = [#tpu.dimension_semantics<arbitrary>], iteration_bounds = array<i64: 1>, scalar_prefetch = 0 : i64, scratch_operands = 0 : i64, tpu.core_type = #tpu.core_type<tc>, window_params = [{pipeline_mode = #tpu.pipeline_mode<synchronous>, transform_indices = @transform_0, window_bounds = array<i64: 4, 512>}, {pipeline_mode = #tpu.pipeline_mode<synchronous>, transform_indices = @transform_1, window_bounds = array<i64: 9, 512>}, {pipeline_mode = #tpu.pipeline_mode<synchronous>, transform_indices = @transform_2, window_bounds = array<i64: 4, 1>}, {pipeline_mode = #tpu.pipeline_mode<synchronous>, transform_indices = @transform_3, window_bounds = array<i64: 4, 1>}, {pipeline_mode = #tpu.pipeline_mode<synchronous>, transform_indices = @transform_4, window_bounds = array<i64: 9, 8, 4>}, {pipeline_mode = #tpu.pipeline_mode<synchronous>, transform_indices = @transform_5, window_bounds = array<i64: 8, 1>}, {pipeline_mode = #tpu.pipeline_mode<synchronous>, transform_indices = @transform_6, window_bounds = array<i64: 12, 1>}, {pipeline_mode = #tpu.pipeline_mode<synchronous>, transform_indices = @transform_7, window_bounds = array<i64: 12, 1>}, {pipeline_mode = #tpu.pipeline_mode<synchronous>, transform_indices = @transform_8, window_bounds = array<i64: 9, 8, 12>}, {pipeline_mode = #tpu.pipeline_mode<synchronous>, transform_indices = @transform_9, window_bounds = array<i64: 8, 1>}, {pipeline_mode = #tpu.pipeline_mode<synchronous>, transform_indices = @transform_10, window_bounds = array<i64: 20, 512>}]} {
    %c0 = arith.constant 0 : index
    %c0_0 = arith.constant 0 : index
    %0 = vector.load %arg1[%c0, %c0_0] : memref<4x512xf32, #tpu.memory_space<vmem>>, vector<4x512xf32>
    %c0_1 = arith.constant 0 : index
    %c0_2 = arith.constant 0 : index
    %1 = vector.load %arg11[%c0_1, %c0_2] : memref<20x512xf32, #tpu.memory_space<vmem>>, vector<4x512xf32>
    tpu.vector_store %arg11[%c0_1, %c0_2], %0 {strides = array<i32>} : memref<20x512xf32, #tpu.memory_space<vmem>>, vector<4x512xf32>,
    %c0_3 = arith.constant 0 : index
    %c0_4 = arith.constant 0 : index
    %2 = vector.load %arg11[%c0_3, %c0_4] : memref<20x512xf32, #tpu.memory_space<vmem>>, vector<4x512xf32>
    %cst = arith.constant dense<0.000000e+00> : vector<4xf32>
    %3 = vector.multi_reduction <add>, %2, %cst [1] : vector<4x512xf32> to vector<4xf32>
    %4 = vector.shape_cast %3 : vector<4xf32> to vector<4x1xf32>
    %5 = arith.mulf %2, %2 : vector<4x512xf32>
    %cst_5 = arith.constant dense<0.000000e+00> : vector<4xf32>
    %6 = vector.multi_reduction <add>, %5, %cst_5 [1] : vector<4x512xf32> to vector<4xf32>
    %7 = vector.shape_cast %6 : vector<4xf32> to vector<4x1xf32>
    %cst_6 = arith.constant 0.001953125 : f32
    %8 = vector.broadcast %cst_6 : f32 to vector<4x1xf32>
    %9 = arith.mulf %4, %8 : vector<4x1xf32>
    %cst_7 = arith.constant 0.001953125 : f32
    %10 = vector.broadcast %cst_7 : f32 to vector<4x1xf32>
    %11 = arith.mulf %7, %10 : vector<4x1xf32>
    %12 = arith.mulf %9, %9 : vector<4x1xf32>
    %13 = arith.subf %11, %12 : vector<4x1xf32>
    %cst_8 = arith.constant 0.000000e+00 : f32
    %14 = vector.broadcast %cst_8 : f32 to vector<4x1xf32>
    %15 = arith.maximumf %13, %14 : vector<4x1xf32>
    %c0_9 = arith.constant 0 : index
    %c0_10 = arith.constant 0 : index
    %16 = vector.load %arg3[%c0_9, %c0_10] : memref<4x1xf32, #tpu.memory_space<vmem>>, vector<4x1xf32>
    %cst_11 = arith.constant 9.99999974E-6 : f32
    %17 = vector.broadcast %cst_11 : f32 to vector<4x1xf32>
    %18 = arith.addf %15, %17 : vector<4x1xf32>
    %19 = math.rsqrt %18 : vector<4x1xf32>
    %20 = arith.mulf %16, %19 : vector<4x1xf32>
    %c0_12 = arith.constant 0 : index
    %c0_13 = arith.constant 0 : index
    %21 = vector.load %arg4[%c0_12, %c0_13] : memref<4x1xf32, #tpu.memory_space<vmem>>, vector<4x1xf32>
    %22 = arith.mulf %9, %20 : vector<4x1xf32>
    %23 = arith.subf %21, %22 : vector<4x1xf32>
    %24 = vector.broadcast %20 : vector<4x1xf32> to vector<4x512xf32>
    %25 = arith.mulf %2, %24 : vector<4x512xf32>
    %26 = vector.broadcast %23 : vector<4x1xf32> to vector<4x512xf32>
    %27 = arith.addf %25, %26 : vector<4x512xf32>
    %cst_14 = arith.constant 0.000000e+00 : f32
    %28 = vector.broadcast %cst_14 : f32 to vector<4x512xf32>
    %29 = arith.maximumf %27, %28 : vector<4x512xf32>
    %cst_15 = arith.constant 0.000000e+00 : f32
    %30 = vector.broadcast %cst_15 : f32 to vector<8x512xf32>
    %c17_i32 = arith.constant 17 : i32
    %31 = tpu.dynamic_rotate %29 by %c17_i32 dim 1 : vector<4x512xf32>, i32 -> vector<4x512xf32>
    %c0_16 = arith.constant 0 : index
    %c0_17 = arith.constant 0 : index
    %32 = vector.load %arg2[%c0_16, %c0_17] : memref<9x512xf32, #tpu.memory_space<vmem>>, vector<1x512xf32>
    %33 = vector.broadcast %32 : vector<1x512xf32> to vector<4x512xf32>
    %34 = arith.mulf %31, %33 : vector<4x512xf32>
    %c0_18 = arith.constant 0 : index
    %c0_19 = arith.constant 0 : index
    %c0_20 = arith.constant 0 : index
    %35 = vector.load %arg5[%c0_18, %c0_19, %c0_20] : memref<9x8x4xf32, #tpu.memory_space<vmem>>, vector<1x8x4xf32>
    %36 = vector.shape_cast %35 : vector<1x8x4xf32> to vector<8x4xf32>
    %cst_21 = arith.constant dense<0.000000e+00> : vector<8x512xf32>
    %37 = tpu.matmul %36, %34, %cst_21 {dimension_numbers = #tpu.dot_dimension_numbers<[1], [0], [0], [1], [0, 0, 1, 1], [], []>} : vector<8x4xf32>, vector<4x512xf32>, vector<8x512xf32> -> vector<8x512xf32>
    %38 = arith.addf %30, %37 : vector<8x512xf32>
    %c16_i32 = arith.constant 16 : i32
    %39 = tpu.dynamic_rotate %29 by %c16_i32 dim 1 : vector<4x512xf32>, i32 -> vector<4x512xf32>
    %c1 = arith.constant 1 : index
    %c0_22 = arith.constant 0 : index
    %40 = vector.load %arg2[%c1, %c0_22] : memref<9x512xf32, #tpu.memory_space<vmem>>, vector<1x512xf32>
    %41 = vector.broadcast %40 : vector<1x512xf32> to vector<4x512xf32>
    %42 = arith.mulf %39, %41 : vector<4x512xf32>
    %c1_23 = arith.constant 1 : index
    %c0_24 = arith.constant 0 : index
    %c0_25 = arith.constant 0 : index
    %43 = vector.load %arg5[%c1_23, %c0_24, %c0_25] : memref<9x8x4xf32, #tpu.memory_space<vmem>>, vector<1x8x4xf32>
    %44 = vector.shape_cast %43 : vector<1x8x4xf32> to vector<8x4xf32>
    %cst_26 = arith.constant dense<0.000000e+00> : vector<8x512xf32>
    %45 = tpu.matmul %44, %42, %cst_26 {dimension_numbers = #tpu.dot_dimension_numbers<[1], [0], [0], [1], [0, 0, 1, 1], [], []>} : vector<8x4xf32>, vector<4x512xf32>, vector<8x512xf32> -> vector<8x512xf32>
    %46 = arith.addf %38, %45 : vector<8x512xf32>
    %c15_i32 = arith.constant 15 : i32
    %47 = tpu.dynamic_rotate %29 by %c15_i32 dim 1 : vector<4x512xf32>, i32 -> vector<4x512xf32>
    %c2 = arith.constant 2 : index
    %c0_27 = arith.constant 0 : index
    %48 = vector.load %arg2[%c2, %c0_27] : memref<9x512xf32, #tpu.memory_space<vmem>>, vector<1x512xf32>
    %49 = vector.broadcast %48 : vector<1x512xf32> to vector<4x512xf32>
    %50 = arith.mulf %47, %49 : vector<4x512xf32>
    %c2_28 = arith.constant 2 : index
    %c0_29 = arith.constant 0 : index
    %c0_30 = arith.constant 0 : index
    %51 = vector.load %arg5[%c2_28, %c0_29, %c0_30] : memref<9x8x4xf32, #tpu.memory_space<vmem>>, vector<1x8x4xf32>
    %52 = vector.shape_cast %51 : vector<1x8x4xf32> to vector<8x4xf32>
    %cst_31 = arith.constant dense<0.000000e+00> : vector<8x512xf32>
    %53 = tpu.matmul %52, %50, %cst_31 {dimension_numbers = #tpu.dot_dimension_numbers<[1], [0], [0], [1], [0, 0, 1, 1], [], []>} : vector<8x4xf32>, vector<4x512xf32>, vector<8x512xf32> -> vector<8x512xf32>
    %54 = arith.addf %46, %53 : vector<8x512xf32>
    %c1_i32 = arith.constant 1 : i32
    %55 = tpu.dynamic_rotate %29 by %c1_i32 dim 1 : vector<4x512xf32>, i32 -> vector<4x512xf32>
    %c3 = arith.constant 3 : index
    %c0_32 = arith.constant 0 : index
    %56 = vector.load %arg2[%c3, %c0_32] : memref<9x512xf32, #tpu.memory_space<vmem>>, vector<1x512xf32>
    %57 = vector.broadcast %56 : vector<1x512xf32> to vector<4x512xf32>
    %58 = arith.mulf %55, %57 : vector<4x512xf32>
    %c3_33 = arith.constant 3 : index
    %c0_34 = arith.constant 0 : index
    %c0_35 = arith.constant 0 : index
    %59 = vector.load %arg5[%c3_33, %c0_34, %c0_35] : memref<9x8x4xf32, #tpu.memory_space<vmem>>, vector<1x8x4xf32>
    %60 = vector.shape_cast %59 : vector<1x8x4xf32> to vector<8x4xf32>
    %cst_36 = arith.constant dense<0.000000e+00> : vector<8x512xf32>
    %61 = tpu.matmul %60, %58, %cst_36 {dimension_numbers = #tpu.dot_dimension_numbers<[1], [0], [0], [1], [0, 0, 1, 1], [], []>} : vector<8x4xf32>, vector<4x512xf32>, vector<8x512xf32> -> vector<8x512xf32>
    %62 = arith.addf %54, %61 : vector<8x512xf32>
    %c4 = arith.constant 4 : index
    %c0_37 = arith.constant 0 : index
    %c0_38 = arith.constant 0 : index
    %63 = vector.load %arg5[%c4, %c0_37, %c0_38] : memref<9x8x4xf32, #tpu.memory_space<vmem>>, vector<1x8x4xf32>
    %64 = vector.shape_cast %63 : vector<1x8x4xf32> to vector<8x4xf32>
    %cst_39 = arith.constant dense<0.000000e+00> : vector<8x512xf32>
    %65 = tpu.matmul %64, %29, %cst_39 {dimension_numbers = #tpu.dot_dimension_numbers<[1], [0], [0], [1], [0, 0, 1, 1], [], []>} : vector<8x4xf32>, vector<4x512xf32>, vector<8x512xf32> -> vector<8x512xf32>
    %66 = arith.addf %62, %65 : vector<8x512xf32>
    %c511_i32 = arith.constant 511 : i32
    %67 = tpu.dynamic_rotate %29 by %c511_i32 dim 1 : vector<4x512xf32>, i32 -> vector<4x512xf32>
    %c5 = arith.constant 5 : index
    %c0_40 = arith.constant 0 : index
    %68 = vector.load %arg2[%c5, %c0_40] : memref<9x512xf32, #tpu.memory_space<vmem>>, vector<1x512xf32>
    %69 = vector.broadcast %68 : vector<1x512xf32> to vector<4x512xf32>
    %70 = arith.mulf %67, %69 : vector<4x512xf32>
    %c5_41 = arith.constant 5 : index
    %c0_42 = arith.constant 0 : index
    %c0_43 = arith.constant 0 : index
    %71 = vector.load %arg5[%c5_41, %c0_42, %c0_43] : memref<9x8x4xf32, #tpu.memory_space<vmem>>, vector<1x8x4xf32>
    %72 = vector.shape_cast %71 : vector<1x8x4xf32> to vector<8x4xf32>
    %cst_44 = arith.constant dense<0.000000e+00> : vector<8x512xf32>
    %73 = tpu.matmul %72, %70, %cst_44 {dimension_numbers = #tpu.dot_dimension_numbers<[1], [0], [0], [1], [0, 0, 1, 1], [], []>} : vector<8x4xf32>, vector<4x512xf32>, vector<8x512xf32> -> vector<8x512xf32>
    %74 = arith.addf %66, %73 : vector<8x512xf32>
    %c497_i32 = arith.constant 497 : i32
    %75 = tpu.dynamic_rotate %29 by %c497_i32 dim 1 : vector<4x512xf32>, i32 -> vector<4x512xf32>
    %c6 = arith.constant 6 : index
    %c0_45 = arith.constant 0 : index
    %76 = vector.load %arg2[%c6, %c0_45] : memref<9x512xf32, #tpu.memory_space<vmem>>, vector<1x512xf32>
    %77 = vector.broadcast %76 : vector<1x512xf32> to vector<4x512xf32>
    %78 = arith.mulf %75, %77 : vector<4x512xf32>
    %c6_46 = arith.constant 6 : index
    %c0_47 = arith.constant 0 : index
    %c0_48 = arith.constant 0 : index
    %79 = vector.load %arg5[%c6_46, %c0_47, %c0_48] : memref<9x8x4xf32, #tpu.memory_space<vmem>>, vector<1x8x4xf32>
    %80 = vector.shape_cast %79 : vector<1x8x4xf32> to vector<8x4xf32>
    %cst_49 = arith.constant dense<0.000000e+00> : vector<8x512xf32>
    %81 = tpu.matmul %80, %78, %cst_49 {dimension_numbers = #tpu.dot_dimension_numbers<[1], [0], [0], [1], [0, 0, 1, 1], [], []>} : vector<8x4xf32>, vector<4x512xf32>, vector<8x512xf32> -> vector<8x512xf32>
    %82 = arith.addf %74, %81 : vector<8x512xf32>
    %c496_i32 = arith.constant 496 : i32
    %83 = tpu.dynamic_rotate %29 by %c496_i32 dim 1 : vector<4x512xf32>, i32 -> vector<4x512xf32>
    %c7 = arith.constant 7 : index
    %c0_50 = arith.constant 0 : index
    %84 = vector.load %arg2[%c7, %c0_50] : memref<9x512xf32, #tpu.memory_space<vmem>>, vector<1x512xf32>
    %85 = vector.broadcast %84 : vector<1x512xf32> to vector<4x512xf32>
    %86 = arith.mulf %83, %85 : vector<4x512xf32>
    %c7_51 = arith.constant 7 : index
    %c0_52 = arith.constant 0 : index
    %c0_53 = arith.constant 0 : index
    %87 = vector.load %arg5[%c7_51, %c0_52, %c0_53] : memref<9x8x4xf32, #tpu.memory_space<vmem>>, vector<1x8x4xf32>
    %88 = vector.shape_cast %87 : vector<1x8x4xf32> to vector<8x4xf32>
    %cst_54 = arith.constant dense<0.000000e+00> : vector<8x512xf32>
    %89 = tpu.matmul %88, %86, %cst_54 {dimension_numbers = #tpu.dot_dimension_numbers<[1], [0], [0], [1], [0, 0, 1, 1], [], []>} : vector<8x4xf32>, vector<4x512xf32>, vector<8x512xf32> -> vector<8x512xf32>
    %90 = arith.addf %82, %89 : vector<8x512xf32>
    %c495_i32 = arith.constant 495 : i32
    %91 = tpu.dynamic_rotate %29 by %c495_i32 dim 1 : vector<4x512xf32>, i32 -> vector<4x512xf32>
    %c8 = arith.constant 8 : index
    %c0_55 = arith.constant 0 : index
    %92 = vector.load %arg2[%c8, %c0_55] : memref<9x512xf32, #tpu.memory_space<vmem>>, vector<1x512xf32>
    %93 = vector.broadcast %92 : vector<1x512xf32> to vector<4x512xf32>
    %94 = arith.mulf %91, %93 : vector<4x512xf32>
    %c8_56 = arith.constant 8 : index
    %c0_57 = arith.constant 0 : index
    %c0_58 = arith.constant 0 : index
    %95 = vector.load %arg5[%c8_56, %c0_57, %c0_58] : memref<9x8x4xf32, #tpu.memory_space<vmem>>, vector<1x8x4xf32>
    %96 = vector.shape_cast %95 : vector<1x8x4xf32> to vector<8x4xf32>
    %cst_59 = arith.constant dense<0.000000e+00> : vector<8x512xf32>
    %97 = tpu.matmul %96, %94, %cst_59 {dimension_numbers = #tpu.dot_dimension_numbers<[1], [0], [0], [1], [0, 0, 1, 1], [], []>} : vector<8x4xf32>, vector<4x512xf32>, vector<8x512xf32> -> vector<8x512xf32>
    %98 = arith.addf %90, %97 : vector<8x512xf32>
    %c0_60 = arith.constant 0 : index
    %c0_61 = arith.constant 0 : index
    %99 = vector.load %arg6[%c0_60, %c0_61] : memref<8x1xf32, #tpu.memory_space<vmem>>, vector<8x1xf32>
    %100 = vector.broadcast %99 : vector<8x1xf32> to vector<8x512xf32>
    %101 = arith.addf %98, %100 : vector<8x512xf32>
    %c4_62 = arith.constant 4 : index
    %c0_63 = arith.constant 0 : index
    %102 = vector.load %arg11[%c4_62, %c0_63] : memref<20x512xf32, #tpu.memory_space<vmem>>, vector<8x512xf32>
    tpu.vector_store %arg11[%c4_62, %c0_63], %101 {strides = array<i32>} : memref<20x512xf32, #tpu.memory_space<vmem>>, vector<8x512xf32>,
    %c0_64 = arith.constant 0 : index
    %c0_65 = arith.constant 0 : index
    %103 = vector.load %arg11[%c0_64, %c0_65] : memref<20x512xf32, #tpu.memory_space<vmem>>, vector<12x512xf32>
    %cst_66 = arith.constant dense<0.000000e+00> : vector<12xf32>
    %104 = vector.multi_reduction <add>, %103, %cst_66 [1] : vector<12x512xf32> to vector<12xf32>
    %105 = vector.shape_cast %104 : vector<12xf32> to vector<12x1xf32>
    %106 = arith.mulf %103, %103 : vector<12x512xf32>
    %cst_67 = arith.constant dense<0.000000e+00> : vector<12xf32>
    %107 = vector.multi_reduction <add>, %106, %cst_67 [1] : vector<12x512xf32> to vector<12xf32>
    %108 = vector.shape_cast %107 : vector<12xf32> to vector<12x1xf32>
    %cst_68 = arith.constant 0.001953125 : f32
    %109 = vector.broadcast %cst_68 : f32 to vector<12x1xf32>
    %110 = arith.mulf %105, %109 : vector<12x1xf32>
    %cst_69 = arith.constant 0.001953125 : f32
    %111 = vector.broadcast %cst_69 : f32 to vector<12x1xf32>
    %112 = arith.mulf %108, %111 : vector<12x1xf32>
    %113 = arith.mulf %110, %110 : vector<12x1xf32>
    %114 = arith.subf %112, %113 : vector<12x1xf32>
    %cst_70 = arith.constant 0.000000e+00 : f32
    %115 = vector.broadcast %cst_70 : f32 to vector<12x1xf32>
    %116 = arith.maximumf %114, %115 : vector<12x1xf32>
    %c0_71 = arith.constant 0 : index
    %c0_72 = arith.constant 0 : index
    %117 = vector.load %arg7[%c0_71, %c0_72] : memref<12x1xf32, #tpu.memory_space<vmem>>, vector<12x1xf32>
    %cst_73 = arith.constant 9.99999974E-6 : f32
    %118 = vector.broadcast %cst_73 : f32 to vector<12x1xf32>
    %119 = arith.addf %116, %118 : vector<12x1xf32>
    %120 = math.rsqrt %119 : vector<12x1xf32>
    %121 = arith.mulf %117, %120 : vector<12x1xf32>
    %c0_74 = arith.constant 0 : index
    %c0_75 = arith.constant 0 : index
    %122 = vector.load %arg8[%c0_74, %c0_75] : memref<12x1xf32, #tpu.memory_space<vmem>>, vector<12x1xf32>
    %123 = arith.mulf %110, %121 : vector<12x1xf32>
    %124 = arith.subf %122, %123 : vector<12x1xf32>
    %125 = vector.broadcast %121 : vector<12x1xf32> to vector<12x512xf32>
    %126 = arith.mulf %103, %125 : vector<12x512xf32>
    %127 = vector.broadcast %124 : vector<12x1xf32> to vector<12x512xf32>
    %128 = arith.addf %126, %127 : vector<12x512xf32>
    %cst_76 = arith.constant 0.000000e+00 : f32
    %129 = vector.broadcast %cst_76 : f32 to vector<12x512xf32>
    %130 = arith.maximumf %128, %129 : vector<12x512xf32>
    %cst_77 = arith.constant 0.000000e+00 : f32
    %131 = vector.broadcast %cst_77 : f32 to vector<8x512xf32>
    %c17_i32_78 = arith.constant 17 : i32
    %132 = tpu.dynamic_rotate %130 by %c17_i32_78 dim 1 : vector<12x512xf32>, i32 -> vector<12x512xf32>
    %c0_79 = arith.constant 0 : index
    %c0_80 = arith.constant 0 : index
    %133 = vector.load %arg2[%c0_79, %c0_80] : memref<9x512xf32, #tpu.memory_space<vmem>>, vector<1x512xf32>
    %134 = vector.broadcast %133 : vector<1x512xf32> to vector<12x512xf32>
    %135 = arith.mulf %132, %134 : vector<12x512xf32>
    %c0_81 = arith.constant 0 : index
    %c0_82 = arith.constant 0 : index
    %c0_83 = arith.constant 0 : index
    %136 = vector.load %arg9[%c0_81, %c0_82, %c0_83] : memref<9x8x12xf32, #tpu.memory_space<vmem>>, vector<1x8x12xf32>
    %137 = vector.shape_cast %136 : vector<1x8x12xf32> to vector<8x12xf32>
    %cst_84 = arith.constant dense<0.000000e+00> : vector<8x512xf32>
    %138 = tpu.matmul %137, %135, %cst_84 {dimension_numbers = #tpu.dot_dimension_numbers<[1], [0], [0], [1], [0, 0, 1, 1], [], []>} : vector<8x12xf32>, vector<12x512xf32>, vector<8x512xf32> -> vector<8x512xf32>
    %139 = arith.addf %131, %138 : vector<8x512xf32>
    %c16_i32_85 = arith.constant 16 : i32
    %140 = tpu.dynamic_rotate %130 by %c16_i32_85 dim 1 : vector<12x512xf32>, i32 -> vector<12x512xf32>
    %c1_86 = arith.constant 1 : index
    %c0_87 = arith.constant 0 : index
    %141 = vector.load %arg2[%c1_86, %c0_87] : memref<9x512xf32, #tpu.memory_space<vmem>>, vector<1x512xf32>
    %142 = vector.broadcast %141 : vector<1x512xf32> to vector<12x512xf32>
    %143 = arith.mulf %140, %142 : vector<12x512xf32>
    %c1_88 = arith.constant 1 : index
    %c0_89 = arith.constant 0 : index
    %c0_90 = arith.constant 0 : index
    %144 = vector.load %arg9[%c1_88, %c0_89, %c0_90] : memref<9x8x12xf32, #tpu.memory_space<vmem>>, vector<1x8x12xf32>
    %145 = vector.shape_cast %144 : vector<1x8x12xf32> to vector<8x12xf32>
    %cst_91 = arith.constant dense<0.000000e+00> : vector<8x512xf32>
    %146 = tpu.matmul %145, %143, %cst_91 {dimension_numbers = #tpu.dot_dimension_numbers<[1], [0], [0], [1], [0, 0, 1, 1], [], []>} : vector<8x12xf32>, vector<12x512xf32>, vector<8x512xf32> -> vector<8x512xf32>
    %147 = arith.addf %139, %146 : vector<8x512xf32>
    %c15_i32_92 = arith.constant 15 : i32
    %148 = tpu.dynamic_rotate %130 by %c15_i32_92 dim 1 : vector<12x512xf32>, i32 -> vector<12x512xf32>
    %c2_93 = arith.constant 2 : index
    %c0_94 = arith.constant 0 : index
    %149 = vector.load %arg2[%c2_93, %c0_94] : memref<9x512xf32, #tpu.memory_space<vmem>>, vector<1x512xf32>
    %150 = vector.broadcast %149 : vector<1x512xf32> to vector<12x512xf32>
    %151 = arith.mulf %148, %150 : vector<12x512xf32>
    %c2_95 = arith.constant 2 : index
    %c0_96 = arith.constant 0 : index
    %c0_97 = arith.constant 0 : index
    %152 = vector.load %arg9[%c2_95, %c0_96, %c0_97] : memref<9x8x12xf32, #tpu.memory_space<vmem>>, vector<1x8x12xf32>
    %153 = vector.shape_cast %152 : vector<1x8x12xf32> to vector<8x12xf32>
    %cst_98 = arith.constant dense<0.000000e+00> : vector<8x512xf32>
    %154 = tpu.matmul %153, %151, %cst_98 {dimension_numbers = #tpu.dot_dimension_numbers<[1], [0], [0], [1], [0, 0, 1, 1], [], []>} : vector<8x12xf32>, vector<12x512xf32>, vector<8x512xf32> -> vector<8x512xf32>
    %155 = arith.addf %147, %154 : vector<8x512xf32>
    %c1_i32_99 = arith.constant 1 : i32
    %156 = tpu.dynamic_rotate %130 by %c1_i32_99 dim 1 : vector<12x512xf32>, i32 -> vector<12x512xf32>
    %c3_100 = arith.constant 3 : index
    %c0_101 = arith.constant 0 : index
    %157 = vector.load %arg2[%c3_100, %c0_101] : memref<9x512xf32, #tpu.memory_space<vmem>>, vector<1x512xf32>
    %158 = vector.broadcast %157 : vector<1x512xf32> to vector<12x512xf32>
    %159 = arith.mulf %156, %158 : vector<12x512xf32>
    %c3_102 = arith.constant 3 : index
    %c0_103 = arith.constant 0 : index
    %c0_104 = arith.constant 0 : index
    %160 = vector.load %arg9[%c3_102, %c0_103, %c0_104] : memref<9x8x12xf32, #tpu.memory_space<vmem>>, vector<1x8x12xf32>
    %161 = vector.shape_cast %160 : vector<1x8x12xf32> to vector<8x12xf32>
    %cst_105 = arith.constant dense<0.000000e+00> : vector<8x512xf32>
    %162 = tpu.matmul %161, %159, %cst_105 {dimension_numbers = #tpu.dot_dimension_numbers<[1], [0], [0], [1], [0, 0, 1, 1], [], []>} : vector<8x12xf32>, vector<12x512xf32>, vector<8x512xf32> -> vector<8x512xf32>
    %163 = arith.addf %155, %162 : vector<8x512xf32>
    %c4_106 = arith.constant 4 : index
    %c0_107 = arith.constant 0 : index
    %c0_108 = arith.constant 0 : index
    %164 = vector.load %arg9[%c4_106, %c0_107, %c0_108] : memref<9x8x12xf32, #tpu.memory_space<vmem>>, vector<1x8x12xf32>
    %165 = vector.shape_cast %164 : vector<1x8x12xf32> to vector<8x12xf32>
    %cst_109 = arith.constant dense<0.000000e+00> : vector<8x512xf32>
    %166 = tpu.matmul %165, %130, %cst_109 {dimension_numbers = #tpu.dot_dimension_numbers<[1], [0], [0], [1], [0, 0, 1, 1], [], []>} : vector<8x12xf32>, vector<12x512xf32>, vector<8x512xf32> -> vector<8x512xf32>
    %167 = arith.addf %163, %166 : vector<8x512xf32>
    %c511_i32_110 = arith.constant 511 : i32
    %168 = tpu.dynamic_rotate %130 by %c511_i32_110 dim 1 : vector<12x512xf32>, i32 -> vector<12x512xf32>
    %c5_111 = arith.constant 5 : index
    %c0_112 = arith.constant 0 : index
    %169 = vector.load %arg2[%c5_111, %c0_112] : memref<9x512xf32, #tpu.memory_space<vmem>>, vector<1x512xf32>
    %170 = vector.broadcast %169 : vector<1x512xf32> to vector<12x512xf32>
    %171 = arith.mulf %168, %170 : vector<12x512xf32>
    %c5_113 = arith.constant 5 : index
    %c0_114 = arith.constant 0 : index
    %c0_115 = arith.constant 0 : index
    %172 = vector.load %arg9[%c5_113, %c0_114, %c0_115] : memref<9x8x12xf32, #tpu.memory_space<vmem>>, vector<1x8x12xf32>
    %173 = vector.shape_cast %172 : vector<1x8x12xf32> to vector<8x12xf32>
    %cst_116 = arith.constant dense<0.000000e+00> : vector<8x512xf32>
    %174 = tpu.matmul %173, %171, %cst_116 {dimension_numbers = #tpu.dot_dimension_numbers<[1], [0], [0], [1], [0, 0, 1, 1], [], []>} : vector<8x12xf32>, vector<12x512xf32>, vector<8x512xf32> -> vector<8x512xf32>
    %175 = arith.addf %167, %174 : vector<8x512xf32>
    %c497_i32_117 = arith.constant 497 : i32
    %176 = tpu.dynamic_rotate %130 by %c497_i32_117 dim 1 : vector<12x512xf32>, i32 -> vector<12x512xf32>
    %c6_118 = arith.constant 6 : index
    %c0_119 = arith.constant 0 : index
    %177 = vector.load %arg2[%c6_118, %c0_119] : memref<9x512xf32, #tpu.memory_space<vmem>>, vector<1x512xf32>
    %178 = vector.broadcast %177 : vector<1x512xf32> to vector<12x512xf32>
    %179 = arith.mulf %176, %178 : vector<12x512xf32>
    %c6_120 = arith.constant 6 : index
    %c0_121 = arith.constant 0 : index
    %c0_122 = arith.constant 0 : index
    %180 = vector.load %arg9[%c6_120, %c0_121, %c0_122] : memref<9x8x12xf32, #tpu.memory_space<vmem>>, vector<1x8x12xf32>
    %181 = vector.shape_cast %180 : vector<1x8x12xf32> to vector<8x12xf32>
    %cst_123 = arith.constant dense<0.000000e+00> : vector<8x512xf32>
    %182 = tpu.matmul %181, %179, %cst_123 {dimension_numbers = #tpu.dot_dimension_numbers<[1], [0], [0], [1], [0, 0, 1, 1], [], []>} : vector<8x12xf32>, vector<12x512xf32>, vector<8x512xf32> -> vector<8x512xf32>
    %183 = arith.addf %175, %182 : vector<8x512xf32>
    %c496_i32_124 = arith.constant 496 : i32
    %184 = tpu.dynamic_rotate %130 by %c496_i32_124 dim 1 : vector<12x512xf32>, i32 -> vector<12x512xf32>
    %c7_125 = arith.constant 7 : index
    %c0_126 = arith.constant 0 : index
    %185 = vector.load %arg2[%c7_125, %c0_126] : memref<9x512xf32, #tpu.memory_space<vmem>>, vector<1x512xf32>
    %186 = vector.broadcast %185 : vector<1x512xf32> to vector<12x512xf32>
    %187 = arith.mulf %184, %186 : vector<12x512xf32>
    %c7_127 = arith.constant 7 : index
    %c0_128 = arith.constant 0 : index
    %c0_129 = arith.constant 0 : index
    %188 = vector.load %arg9[%c7_127, %c0_128, %c0_129] : memref<9x8x12xf32, #tpu.memory_space<vmem>>, vector<1x8x12xf32>
    %189 = vector.shape_cast %188 : vector<1x8x12xf32> to vector<8x12xf32>
    %cst_130 = arith.constant dense<0.000000e+00> : vector<8x512xf32>
    %190 = tpu.matmul %189, %187, %cst_130 {dimension_numbers = #tpu.dot_dimension_numbers<[1], [0], [0], [1], [0, 0, 1, 1], [], []>} : vector<8x12xf32>, vector<12x512xf32>, vector<8x512xf32> -> vector<8x512xf32>
    %191 = arith.addf %183, %190 : vector<8x512xf32>
    %c495_i32_131 = arith.constant 495 : i32
    %192 = tpu.dynamic_rotate %130 by %c495_i32_131 dim 1 : vector<12x512xf32>, i32 -> vector<12x512xf32>
    %c8_132 = arith.constant 8 : index
    %c0_133 = arith.constant 0 : index
    %193 = vector.load %arg2[%c8_132, %c0_133] : memref<9x512xf32, #tpu.memory_space<vmem>>, vector<1x512xf32>
    %194 = vector.broadcast %193 : vector<1x512xf32> to vector<12x512xf32>
    %195 = arith.mulf %192, %194 : vector<12x512xf32>
    %c8_134 = arith.constant 8 : index
    %c0_135 = arith.constant 0 : index
    %c0_136 = arith.constant 0 : index
    %196 = vector.load %arg9[%c8_134, %c0_135, %c0_136] : memref<9x8x12xf32, #tpu.memory_space<vmem>>, vector<1x8x12xf32>
    %197 = vector.shape_cast %196 : vector<1x8x12xf32> to vector<8x12xf32>
    %cst_137 = arith.constant dense<0.000000e+00> : vector<8x512xf32>
    %198 = tpu.matmul %197, %195, %cst_137 {dimension_numbers = #tpu.dot_dimension_numbers<[1], [0], [0], [1], [0, 0, 1, 1], [], []>} : vector<8x12xf32>, vector<12x512xf32>, vector<8x512xf32> -> vector<8x512xf32>
    %199 = arith.addf %191, %198 : vector<8x512xf32>
    %c0_138 = arith.constant 0 : index
    %c0_139 = arith.constant 0 : index
    %200 = vector.load %arg10[%c0_138, %c0_139] : memref<8x1xf32, #tpu.memory_space<vmem>>, vector<8x1xf32>
    %201 = vector.broadcast %200 : vector<8x1xf32> to vector<8x512xf32>
    %202 = arith.addf %199, %201 : vector<8x512xf32>
    %c12 = arith.constant 12 : index
    %c0_140 = arith.constant 0 : index
    %203 = vector.load %arg11[%c12, %c0_140] : memref<20x512xf32, #tpu.memory_space<vmem>>, vector<8x512xf32>
    tpu.vector_store %arg11[%c12, %c0_140], %202 {strides = array<i32>} : memref<20x512xf32, #tpu.memory_space<vmem>>, vector<8x512xf32>,
    return
  }
  func.func @transform_0(%arg0: i32) -> (i32, i32) {
    %c0_i32 = arith.constant 0 : i32
    %c0_i32_0 = arith.constant 0 : i32
    %c0_i32_1 = arith.constant 0 : i32
    return %c0_i32, %c0_i32_0 : i32, i32
  }
  func.func @transform_1(%arg0: i32) -> (i32, i32) {
    %c0_i32 = arith.constant 0 : i32
    %c0_i32_0 = arith.constant 0 : i32
    %c0_i32_1 = arith.constant 0 : i32
    return %c0_i32, %c0_i32_0 : i32, i32
  }
  func.func @transform_2(%arg0: i32) -> (i32, i32) {
    %c0_i32 = arith.constant 0 : i32
    %c0_i32_0 = arith.constant 0 : i32
    %c0_i32_1 = arith.constant 0 : i32
    return %c0_i32, %c0_i32_0 : i32, i32
  }
  func.func @transform_3(%arg0: i32) -> (i32, i32) {
    %c0_i32 = arith.constant 0 : i32
    %c0_i32_0 = arith.constant 0 : i32
    %c0_i32_1 = arith.constant 0 : i32
    return %c0_i32, %c0_i32_0 : i32, i32
  }
  func.func @transform_4(%arg0: i32) -> (i32, i32, i32) {
    %c0_i32 = arith.constant 0 : i32
    %c0_i32_0 = arith.constant 0 : i32
    %c0_i32_1 = arith.constant 0 : i32
    %c0_i32_2 = arith.constant 0 : i32
    return %c0_i32, %c0_i32_0, %c0_i32_1 : i32, i32, i32
  }
  func.func @transform_5(%arg0: i32) -> (i32, i32) {
    %c0_i32 = arith.constant 0 : i32
    %c0_i32_0 = arith.constant 0 : i32
    %c0_i32_1 = arith.constant 0 : i32
    return %c0_i32, %c0_i32_0 : i32, i32
  }
  func.func @transform_6(%arg0: i32) -> (i32, i32) {
    %c0_i32 = arith.constant 0 : i32
    %c0_i32_0 = arith.constant 0 : i32
    %c0_i32_1 = arith.constant 0 : i32
    return %c0_i32, %c0_i32_0 : i32, i32
  }
  func.func @transform_7(%arg0: i32) -> (i32, i32) {
    %c0_i32 = arith.constant 0 : i32
    %c0_i32_0 = arith.constant 0 : i32
    %c0_i32_1 = arith.constant 0 : i32
    return %c0_i32, %c0_i32_0 : i32, i32
  }
  func.func @transform_8(%arg0: i32) -> (i32, i32, i32) {
    %c0_i32 = arith.constant 0 : i32
    %c0_i32_0 = arith.constant 0 : i32
    %c0_i32_1 = arith.constant 0 : i32
    %c0_i32_2 = arith.constant 0 : i32
    return %c0_i32, %c0_i32_0, %c0_i32_1 : i32, i32, i32
  }
  func.func @transform_9(%arg0: i32) -> (i32, i32) {
    %c0_i32 = arith.constant 0 : i32
    %c0_i32_0 = arith.constant 0 : i32
    %c0_i32_1 = arith.constant 0 : i32
    return %c0_i32, %c0_i32_0 : i32, i32
  }
  func.func @transform_10(%arg0: i32) -> (i32, i32) {
    %c0_i32 = arith.constant 0 : i32
    %c0_i32_0 = arith.constant 0 : i32
    %c0_i32_1 = arith.constant 0 : i32
    return %c0_i32, %c0_i32_0 : i32, i32
  }
}

</mosaic_0001>

<bundles_post_ra>
// kernel: tpu_custom_call.1
= control target key start
LH: loop header
LB: loop body
LE: loop exit
PB: predicated region body
PF: predicated region fallthrough
CT: control target
= control target key end

     0   :  { %15 = vsyncpa [#allocation3], 0  ;;  %s3949_s0 = inlined_call_operand.hbm [shape: f32[4,512], index: 0, kind: input, shape index: {}]   ;;  %s3950_s1 = inlined_call_operand.vmem [shape: f32[9,512], index: 1, kind: input, shape index: {}]   ;;  %s3951_s2 = inlined_call_operand.vmem [shape: f32[4,1], index: 2, kind: input, shape index: {}]   ;;  %s3952_s3 = inlined_call_operand.vmem [shape: f32[4,1], index: 3, kind: input, shape index: {}]   ;;  %s3953_s4 = inlined_call_operand.vmem [shape: f32[9,8,4], index: 4, kind: input, shape index: {}]   ;;  %s3954_s5 = inlined_call_operand.vmem [shape: f32[8,1], index: 5, kind: input, shape index: {}]   ;;  %s3955_s6 = inlined_call_operand.vmem [shape: f32[12,1], index: 6, kind: input, shape index: {}]   ;;  %s3956_s7 = inlined_call_operand.vmem [shape: f32[12,1], index: 7, kind: input, shape index: {}]   ;;  %s3957_s8 = inlined_call_operand.vmem [shape: f32[9,8,12], index: 8, kind: input, shape index: {}]   ;;  %s3958_s9 = inlined_call_operand.vmem [shape: f32[8,1], index: 9, kind: input, shape index: {}]   ;;  %s3959_s10 = inlined_call_operand.hbm [shape: f32[20,512], index: 10, kind: output, shape index: {}]  }
   0x1   :  { %16 = vsyncpa [#allocation4], 0  ;;  %s22_s15 = sshll.u32 %s3949_s0, 4  ;;  %s2959_s16 = smov [#allocation2]   ;;  %s23_s15 = int_to_ptr.hbm [resolvable:$true] %s22_s15 }
   0x2   :  { %s24_s17 = sshll.u32 %s2959_s16, 4  ;;  %s25_s17 = int_to_ptr.vmem [resolvable:$true] %s24_s17 }
   0x3   :  { %27 = dma.hbm_to_vmem [thread:$0]  %s23_s15, 256, %s25_s17, [#allocation3]  }
   0x4   :  { %2955 = dma.done.wait [#allocation3], 256  }
   0x5   :  { %2956 = vsyncadd [#allocation3], 4294967040  ;;  %v50_v0 = vld [vmem:[#allocation2] sm:$0xff]  ;;  %v51_v1 = vld [vmem:[#allocation2 + $0x8] sm:$0xff]  ;;  %vm73_vm0 = vcmask 1043456   ;;  %v2960_v28 = vmov 0   ;;  %v147_v63 = vlaneseq }
   0x6   :  { %54 = vst [vmem:[#allocation1] ss:$2 sm:$0xff] %v50_v0  ;;  %2898 = vset.pattern.permute.xlu1 %v2960_v28  ;;  %2899 = vset.pattern.permute.xlu2 %v2960_v28  ;;  %v101_v42 = vld [vmem:[%s3951_s2] sm:$0xf]  ;;  %s2961_s2 = smov 16   ;;  %s2963_s21 = smov 17  }
   0x7   :  { %56 = vst [vmem:[#allocation1 + $0x10] ss:$2 sm:$0xff] %v51_v1  ;;  %2900 = vset.pattern.permute.xlu0 %v2960_v28  ;;  %v114_v47 = vld [vmem:[%s3952_s3] sm:$0xf]  ;;  %s2962_s3 = smov 15   ;;  %s2964_s22 = smov 1  }
   0x8   :  { %s2965_s23 = smov 127   ;;  %s2966_s24 = smov 113   ;;  %v3116_v1 = vand.u32 127, %v147_v63  ;;  %vm199_vm5 = vcmask 31744  }
   0x9   :  { %s2967_s25 = smov 112   ;;  %s2968_s26 = smov 111  }
   0xa   :  { %vm177_vm4 = vcmp.lt.s32.totalorder %v3116_v1, 16  ;;  %vm398_vm6 = vcmp.lt.s32.totalorder %v3116_v1, 15  ;;  %vm149_vm7 = vcmp.lt.s32.totalorder %v3116_v1, 17  ;;  %vm527_vm8 = vcmp.lt.s32.totalorder %v3116_v1, 1  ;;  %s2970_s18 = smov 512  }
   0xb   :  { %vm757_vm9 = vcmp.lt.s32.totalorder %v3116_v1, 127  ;;  %vm886_vm10 = vcmp.lt.s32.totalorder %v3116_v1, 113  ;;  %vm1015_vm11 = vcmp.lt.s32.totalorder %v3116_v1, 112  ;;  %vm1144_vm12 = vcmp.lt.s32.totalorder %v3116_v1, 111 }
   0xd   :  { %v57_v2 = vld.sshfl [vmem:[#allocation1] sm:$0xff pattern:$0x75316420]  ;;  %v58_v3 = vld.sshfl [vmem:[#allocation1 + $0x8] sm:$0xff pattern:$0x75316420] }
   0xe   :  { %v59_v4 = vld.sshfl [vmem:[#allocation1 + $0x10] sm:$0xff pattern:$0x75316420]  ;;  %v60_v5 = vld.sshfl [vmem:[#allocation1 + $0x18] sm:$0xff pattern:$0x75316420] }
   0xf   :  { %65 = vst [vmem:[#allocation5] sm:$0xf] %v57_v2  ;;  %v2711_v2 = vld [vmem:[%s3950_s1 + $0x1] ss:$8 sm:$0xf] }
  0x10   :  { %66 = vst [vmem:[#allocation5 + $0x8] sm:$0xf] %v58_v3  ;;  %v187_v3 = vperm.slane %v2711_v2, 2 }
  0x11   :  { %67 = vst [vmem:[#allocation5 + $0x10] sm:$0xf] %v59_v4 }
  0x12   :  { %68 = vst [vmem:[#allocation5 + $0x18] sm:$0xf] %v60_v5 }
  0x16   :  { %v69_v6 = vld [vmem:[#allocation5] sm:$0xf] }
  0x17   :  { %v70_v7 = vld [vmem:[#allocation5 + $0x8] sm:$0xf]  ;;  %v74_v8 = vsel %vm73_vm0, %v69_v6, 0.0  ;;  %v83_v9 = vmul.f32 %v69_v6, %v69_v6 }
  0x18   :  { %v71_v10 = vld [vmem:[#allocation5 + $0x10] sm:$0xf]  ;;  %v75_v11 = vsel %vm73_vm0, %v70_v7, 0.0  ;;  %v84_v12 = vmul.f32 %v70_v7, %v70_v7 }
  0x19   :  { %v72_v13 = vld [vmem:[#allocation5 + $0x18] sm:$0xf]  ;;  %v76_v14 = vadd.f32 %v75_v11, %v74_v8  ;;  %v77_v15 = vsel %vm73_vm0, %v71_v10, 0.0  ;;  %v85_v16 = vmul.f32 %v71_v10, %v71_v10  ;;  %v87_v17 = vsel %vm73_vm0, %v83_v9, 0.0 }
  0x1a   :  { %v79_v18 = vsel %vm73_vm0, %v72_v13, 0.0  ;;  %v88_v19 = vsel %vm73_vm0, %v84_v12, 0.0  ;;  %v86_v22 = vmul.f32 %v72_v13, %v72_v13  ;;  %v188_v9 = vperm.slane %v2711_v2, 3 }
  0x1b   :  { %v78_v20 = vadd.f32 %v77_v15, %v76_v14  ;;  %v89_v21 = vadd.f32 %v88_v19, %v87_v17  ;;  %v90_v23 = vsel %vm73_vm0, %v85_v16, 0.0  ;;  %v186_v11 = vperm.slane %v2711_v2, 1 }
  0x1c   :  { %v92_v26 = vsel %vm73_vm0, %v86_v22, 0.0  ;;  %v154_v22 = vld [vmem:[%s3950_s1] ss:$8 sm:$0xf] }
  0x1d   :  { %v80_v24 = vadd.f32 %v79_v18, %v78_v20  ;;  %v91_v25 = vadd.f32 %v90_v23, %v89_v21  ;;  %v3138_v21 = vld [vmem:[%s3950_s1 + $0x2] ss:$8 sm:$0xf] }
  0x1e   :  { %v408_v23 = vperm.slane %v3138_v21, 2 }
  0x1f   :  { %81 = vadd.xlane.f32.xlu0 %v80_v24  ;;  %v93_v27 = vadd.f32 %v92_v26, %v91_v25  ;;  %v158_v24 = vperm.slane %v154_v22, 2  ;;  %v159_v25 = vperm.slane %v154_v22, 3 }
  0x27   :  { %94 = vadd.xlane.f32.xlu0 %v93_v27 }
  0x92   :  { %v82_v29 = vpop.xlane.xlu0 %81 }
  0x93   :  { %v96_v30 = vmul.f32 0.001953125, %v82_v29 }
  0x95   :  { %v98_v32 = vmul.f32 %v96_v30, %v96_v30 }
  0x9a   :  { %v95_v31 = vpop.xlane.xlu0 %94 }
  0x9b   :  { %v97_v33 = vmul.f32 0.001953125, %v95_v31 }
  0x9d   :  { %v99_v34 = vsub.f32 %v97_v33, %v98_v32 }
  0x9f   :  { %v100_v35 = vmax.f32 %v99_v34, 0.0 }
  0xa1   :  { %v102_v36 = vadd.f32 1e-05, %v100_v35  ;;  %v168_v35 = vld [vmem:[%s3953_s4] sm:$0xff] }
  0xa3   :  { %2901 = vrsqrt.f32 %v102_v36  ;;  %vm109_vm2 = vweird.f32 %v102_v36 }
  0xa9   :  { %v2902_v37 = vpop.eup %2901 }
  0xaa   :  { %v104_v38 = vmul.f32 %v2902_v37, %v102_v36  ;;  %vm110_vm1 = vweird.f32 %v2902_v37  ;;  %v407_v36 = vperm.slane %v3138_v21, 1 }
  0xab   :  { %vm111_vm3 = vmor %vm109_vm2, %vm110_vm1 }
  0xac   :  { %v105_v39 = vmul.f32 %v2902_v37, %v104_v38  ;;  %v157_v38 = vperm.slane %v154_v22, 1 }
  0xae   :  { %v106_v40 = vmul.f32 0.5, %v105_v39 }
  0xb0   :  { %v107_v41 = vsub.f32 1.5, %v106_v40 }
  0xb2   :  { %v108_v43 = vmul.f32 %v2902_v37, %v107_v41 }
  0xb4   :  { %v112_v44 = vsel %vm111_vm3, %v2902_v37, %v108_v43  ;;  %v156_v37 = vperm.slane %v154_v22, 0 }
  0xb5   :  { %v113_v45 = vmul.f32 %v112_v44, %v101_v42 }
  0xb7   :  { %119 = vperm.xlu1 %2898, %v113_v45   ;;  %v115_v46 = vmul.f32 %v113_v45, %v96_v30 }
  0xb9   :  { %v116_v48 = vsub.f32 %v114_v47, %v115_v46 }
  0xbf   :  { %128 = vperm.xlu1 %2898, %v116_v48   ;;  %v2739_v48 = vld [vmem:[%s3950_s1 + $0x3] ss:$8 sm:$0xf] }
 0x129   :  { %v120_v49 = vpop.permute.xlu1 %119 }
 0x12a   :  { %v122_v50 = vmul.f32 %v120_v49, %v69_v6  ;;  %v123_v51 = vmul.f32 %v120_v49, %v70_v7  ;;  %v125_v52 = vmul.f32 %v120_v49, %v72_v13  ;;  %v124_v60 = vmul.f32 %v120_v49, %v71_v10  ;;  %v2712_v7 = vld [vmem:[%s3953_s4 + $0x8] sm:$0xff]  ;;  %v2730_v49 = vld [vmem:[%s3953_s4 + $0x10] sm:$0xff] }
 0x12b   :  { %v185_v10 = vperm.slane %v2711_v2, 0 }
 0x131   :  { %v129_v53 = vpop.permute.xlu1 %128 }
 0x132   :  { %v131_v54 = vadd.f32 %v129_v53, %v122_v50  ;;  %v132_v55 = vadd.f32 %v129_v53, %v123_v51  ;;  %v134_v56 = vadd.f32 %v129_v53, %v125_v52  ;;  %v133_v61 = vadd.f32 %v129_v53, %v124_v60 }
 0x133   :  { %v536_v50 = vperm.slane %v2739_v48, 1  ;;  %v535_v51 = vperm.slane %v2739_v48, 0  ;;  %v406_v52 = vperm.slane %v3138_v21, 0  ;;  %v409_v53 = vperm.slane %v3138_v21, 3 }
 0x134   :  { %v3044_v57 = vmax.f32 %v131_v54, 0.0  ;;  %v3046_v58 = vmax.f32 %v132_v55, 0.0  ;;  %v3048_v59 = vmax.f32 %v134_v56, 0.0  ;;  %v3056_v62 = vmax.f32 %v133_v61, 0.0 }
 0x136   :  { %175 = vrot.lane.b32.xlu0 %v3048_v59, %s2961_s2  ;;  %171 = vrot.lane.b32.xlu2 %v3046_v58, %s2961_s2 }
 0x137   :  { %169 = vrot.lane.b32.xlu1 %v3044_v57, %s2961_s2 }
 0x13e   :  { %394 = vrot.lane.b32.xlu0 %v3056_v62, %s2962_s3  ;;  %173 = vrot.lane.b32.xlu2 %v3056_v62, %s2961_s2 }
 0x13f   :  { %143 = vrot.lane.b32.xlu1 %v3056_v62, %s2963_s21 }
 0x146   :  { %521 = vrot.lane.b32.xlu0 %v3046_v58, %s2964_s22  ;;  %141 = vrot.lane.b32.xlu2 %v3046_v58, %s2963_s21 }
 0x147   :  { %139 = vrot.lane.b32.xlu1 %v3044_v57, %s2963_s21 }
 0x14e   :  { %145 = vrot.lane.b32.xlu2 %v3048_v59, %s2963_s21  ;;  %519 = vrot.lane.b32.xlu0 %v3044_v57, %s2964_s22 }
 0x14f   :  { %396 = vrot.lane.b32.xlu1 %v3048_v59, %s2962_s3 }
 0x156   :  { %392 = vrot.lane.b32.xlu2 %v3046_v58, %s2962_s3  ;;  %749 = vrot.lane.b32.xlu0 %v3044_v57, %s2965_s23 }
 0x157   :  { %523 = vrot.lane.b32.xlu1 %v3056_v62, %s2964_s22 }
 0x15e   :  { %884 = vrot.lane.b32.xlu0 %v3048_v59, %s2966_s24  ;;  %390 = vrot.lane.b32.xlu2 %v3044_v57, %s2962_s3 }
 0x15f   :  { %753 = vrot.lane.b32.xlu1 %v3056_v62, %s2965_s23 }
 0x166   :  { %1011 = vrot.lane.b32.xlu0 %v3056_v62, %s2967_s25  ;;  %525 = vrot.lane.b32.xlu2 %v3048_v59, %s2964_s22 }
 0x167   :  { %751 = vrot.lane.b32.xlu1 %v3046_v58, %s2965_s23 }
 0x16e   :  { %1009 = vrot.lane.b32.xlu0 %v3046_v58, %s2967_s25  ;;  %755 = vrot.lane.b32.xlu2 %v3048_v59, %s2965_s23 }
 0x16f   :  { %878 = vrot.lane.b32.xlu1 %v3044_v57, %s2966_s24 }
 0x176   :  { %1136 = vrot.lane.b32.xlu0 %v3044_v57, %s2968_s26  ;;  %882 = vrot.lane.b32.xlu2 %v3056_v62, %s2966_s24 }
 0x177   :  { %1013 = vrot.lane.b32.xlu1 %v3048_v59, %s2967_s25 }
 0x17e   :  { %880 = vrot.lane.b32.xlu2 %v3046_v58, %s2966_s24 }
 0x17f   :  { %1140 = vrot.lane.b32.xlu1 %v3056_v62, %s2968_s26 }
 0x186   :  { %1007 = vrot.lane.b32.xlu2 %v3044_v57, %s2967_s25 }
 0x187   :  { %1138 = vrot.lane.b32.xlu1 %v3046_v58, %s2968_s26 }
 0x18e   :  { %1142 = vrot.lane.b32.xlu2 %v3048_v59, %s2968_s26 }
 0x190   :  { %v172_v0 = vpop.permute.xlu2 %171 }
 0x198   :  { %v174_v4 = vpop.permute.xlu2 %173 }
 0x199   :  { %v179_v5 = vsel %vm177_vm4, %v172_v0, %v174_v4 }
 0x19a   :  { %v195_v6 = vmul.f32 %v187_v3, %v179_v5 }
 0x19c   :  { %2717 = vmatpush.msk.msra.mxu2 %vm73_vm0, %v195_v6  ;;  %v537_v6 = vperm.slane %v2739_v48, 2 }
 0x19d   :  { %2718 = vmatmul.msk.f32.vlgmr.msra.gmra.mxu2 %vm199_vm5, %v2712_v7 }
 0x1a0   :  { %v142_v8 = vpop.permute.xlu2 %141 }
 0x1a8   :  { %v176_v12 = vpop.permute.xlu0 %175  ;;  %v146_v13 = vpop.permute.xlu2 %145 }
 0x1a9   :  { %v178_v14 = vsel %vm177_vm4, %v174_v4, %v176_v12  ;;  %v170_v15 = vpop.permute.xlu1 %169 }
 0x1aa   :  { %v180_v16 = vsel %vm177_vm4, %v170_v15, %v172_v0  ;;  %v181_v17 = vsel %vm177_vm4, %v176_v12, %v170_v15  ;;  %v196_v18 = vmul.f32 %v188_v9, %v178_v14  ;;  %v2758_v9 = vld [vmem:[%s3950_s1 + $0x5] ss:$8 sm:$0xf] }
 0x1ab   :  { %v193_v19 = vmul.f32 %v185_v10, %v181_v17  ;;  %v194_v20 = vmul.f32 %v186_v11, %v180_v16  ;;  %v768_v14 = vperm.slane %v2758_v9, 3  ;;  %v3225_v17 = vld [vmem:[%s3950_s1 + $0x6] ss:$8 sm:$0xf] }
 0x1ac   :  { %2719 = vmatpush.msk.msra.mxu3 %vm73_vm0, %v196_v18  ;;  %v896_v21 = vperm.slane %v3225_v17, 2 }
 0x1ad   :  { %2713 = vmatpush.msk.msra.mxu0 %vm73_vm0, %v193_v19  ;;  %2715 = vmatpush.msk.msra.mxu1 %vm73_vm0, %v194_v20  ;;  %v767_v19 = vperm.slane %v2758_v9, 2 }
 0x1ae   :  { %2714 = vmatmul.msk.f32.vlgmr.msra.gmra.mxu0 %vm199_vm5, %v2712_v7  ;;  %2716 = vmatmul.msk.f32.vlgmr.msra.gmra.mxu1 %vm199_vm5, %v2712_v7 }
 0x1af   :  { %2720 = vmatmul.msk.f32.vlgmr.msra.gmra.mxu3 %vm199_vm5, %v2712_v7  ;;  %v538_v7 = vperm.slane %v2739_v48, 3 }
 0x1b0   :  { %v395_v26 = vpop.permute.xlu0 %394  ;;  %v393_v27 = vpop.permute.xlu2 %392 }
 0x1b1   :  { %v400_v28 = vsel %vm398_vm6, %v393_v27, %v395_v26  ;;  %v144_v29 = vpop.permute.xlu1 %143 }
 0x1b2   :  { %v416_v30 = vmul.f32 %v408_v23, %v400_v28  ;;  %v150_v31 = vsel %vm149_vm7, %v144_v29, %v146_v13  ;;  %v151_v32 = vsel %vm149_vm7, %v142_v8, %v144_v29  ;;  %v766_v28 = vperm.slane %v2758_v9, 1 }
 0x1b3   :  { %v166_v33 = vmul.f32 %v158_v24, %v151_v32  ;;  %v167_v34 = vmul.f32 %v159_v25, %v150_v31 }
 0x1b5   :  { %2725 = vmatpush.msk.msrb.mxu2 %vm73_vm0, %v166_v33  ;;  %2727 = vmatpush.msk.msrb.mxu3 %vm73_vm0, %v167_v34 }
 0x1b6   :  { %2726 = vmatmul.msk.f32.vlgmr.msrb.gmra.mxu2 %vm199_vm5, %v168_v35 }
 0x1b7   :  { %2735 = vmatpush.msk.msra.mxu2 %vm73_vm0, %v416_v30  ;;  %2728 = vmatmul.msk.f32.vlgmr.msrb.gmra.mxu3 %vm199_vm5, %v168_v35  ;;  %v895_v30 = vperm.slane %v3225_v17, 1 }
 0x1b8   :  { %v522_v39 = vpop.permute.xlu0 %521  ;;  %v391_v40 = vpop.permute.xlu2 %390 }
 0x1b9   :  { %v401_v41 = vsel %vm398_vm6, %v391_v40, %v393_v27  ;;  %v140_v42 = vpop.permute.xlu1 %139 }
 0x1ba   :  { %v152_v43 = vsel %vm149_vm7, %v140_v42, %v142_v8  ;;  %v153_v44 = vsel %vm149_vm7, %v146_v13, %v140_v42  ;;  %v415_v45 = vmul.f32 %v407_v36, %v401_v41  ;;  %v1265_v42 = vld [vmem:[%s3954_s5] sm:$0xff]  ;;  %s2971_s5 = smov 32  }
 0x1bb   :  { %v164_v46 = vmul.f32 %v156_v37, %v153_v44  ;;  %v165_v47 = vmul.f32 %v157_v38, %v152_v43  ;;  %v2759_v38 = vld [vmem:[%s3953_s4 + $0x28] sm:$0xff]  ;;  %v894_v43 = vperm.slane %v3225_v17, 0  ;;  %v897_v44 = vperm.slane %v3225_v17, 3  ;;  %1268 = vperm.xlu2 %2899, %v1265_v42  }
 0x1bd   :  { %2721 = vmatpush.msk.msrb.mxu0 %vm73_vm0, %v164_v46  ;;  %2723 = vmatpush.msk.msrb.mxu1 %vm73_vm0, %v165_v47 }
 0x1be   :  { %2722 = vmatmul.msk.f32.vlgmr.msrb.gmra.mxu0 %vm199_vm5, %v168_v35  ;;  %2724 = vmatmul.msk.f32.vlgmr.msrb.gmra.mxu1 %vm199_vm5, %v168_v35 }
 0x1bf   :  { %2733 = vmatpush.msk.msra.mxu1 %vm73_vm0, %v415_v45  ;;  %2736 = vmatmul.msk.f32.vlgmr.msra.gmra.mxu2 %vm199_vm5, %v2730_v49 }
 0x1c0   :  { %v520_v54 = vpop.permute.xlu0 %519  ;;  %v526_v55 = vpop.permute.xlu2 %525 }
 0x1c1   :  { %v530_v56 = vsel %vm527_vm8, %v520_v54, %v522_v39  ;;  %v531_v60 = vsel %vm527_vm8, %v526_v55, %v520_v54  ;;  %v397_v61 = vpop.permute.xlu1 %396 }
 0x1c2   :  { %v544_v63 = vmul.f32 %v536_v50, %v530_v56  ;;  %v399_v0 = vsel %vm398_vm6, %v395_v26, %v397_v61  ;;  %v402_v2 = vsel %vm398_vm6, %v397_v61, %v391_v40  ;;  %v543_v3 = vmul.f32 %v535_v51, %v531_v60  ;;  %v2769_v56 = vld [vmem:[%s3953_s4 + $0x30] sm:$0xff] }
 0x1c3   :  { %v414_v4 = vmul.f32 %v406_v52, %v402_v2  ;;  %v417_v5 = vmul.f32 %v409_v53, %v399_v0  ;;  %v2788_v61 = vld [vmem:[%s3950_s1 + $0x20] ss:$8 sm:$0xf] }
 0x1c4   :  { %2743 = vmatpush.msk.msrb.mxu1 %vm73_vm0, %v544_v63  ;;  %v1153_v17 = vperm.slane %v2788_v61, 1 }
 0x1c5   :  { %2731 = vmatpush.msk.msra.mxu0 %vm73_vm0, %v414_v4  ;;  %2737 = vmatpush.msk.msra.mxu3 %vm73_vm0, %v417_v5 }
 0x1c6   :  { %2732 = vmatmul.msk.f32.vlgmr.msra.gmra.mxu0 %vm199_vm5, %v2730_v49  ;;  %2734 = vmatmul.msk.f32.vlgmr.msra.gmra.mxu1 %vm199_vm5, %v2730_v49 }
 0x1c7   :  { %2738 = vmatmul.msk.f32.vlgmr.msra.gmra.mxu3 %vm199_vm5, %v2730_v49  ;;  %2741 = vmatpush.msk.msrb.mxu0 %vm73_vm0, %v543_v3  ;;  %v1155_v3 = vperm.slane %v2788_v61, 3 }
 0x1c8   :  { %2752 = vmatpush.msk.msra.mxu1 %vm73_vm0, %v3046_v58  ;;  %v750_v8 = vpop.permute.xlu0 %749  ;;  %v756_v10 = vpop.permute.xlu2 %755 }
 0x1c9   :  { %2750 = vmatpush.msk.msra.mxu0 %vm73_vm0, %v3044_v57  ;;  %v524_v11 = vpop.permute.xlu1 %523  ;;  %v2740_v57 = vld [vmem:[%s3953_s4 + $0x18] sm:$0xff]  ;;  %v761_v16 = vsel %vm757_vm9, %v756_v10, %v750_v8 }
 0x1ca   :  { %v528_v12 = vsel %vm527_vm8, %v524_v11, %v526_v55  ;;  %v529_v13 = vsel %vm527_vm8, %v522_v39, %v524_v11  ;;  %v776_v18 = vmul.f32 %v768_v14, %v761_v16  ;;  %v2778_v39 = vld [vmem:[%s3950_s1 + $0x7] ss:$8 sm:$0xf]  ;;  %v1152_v16 = vperm.slane %v2788_v61, 0 }
 0x1cb   :  { %v545_v58 = vmul.f32 %v537_v6, %v529_v13  ;;  %v546_v15 = vmul.f32 %v538_v7, %v528_v12  ;;  %v1024_v41 = vperm.slane %v2778_v39, 1  ;;  %v1023_v46 = vperm.slane %v2778_v39, 0  ;;  %v2779_v11 = vld [vmem:[%s3953_s4 + $0x38] sm:$0xff] }
 0x1cc   :  { %v1025_v63 = vperm.slane %v2778_v39, 2  ;;  %v1026_v0 = vperm.slane %v2778_v39, 3  ;;  %v1154_v13 = vperm.slane %v2788_v61, 2 }
 0x1cd   :  { %2745 = vmatpush.msk.msrb.mxu2 %vm73_vm0, %v545_v58  ;;  %2747 = vmatpush.msk.msrb.mxu3 %vm73_vm0, %v546_v15 }
 0x1ce   :  { %2742 = vmatmul.msk.f32.vlgmr.msrb.gmra.mxu0 %vm199_vm5, %v2740_v57  ;;  %2744 = vmatmul.msk.f32.vlgmr.msrb.gmra.mxu1 %vm199_vm5, %v2740_v57 }
 0x1cf   :  { %2746 = vmatmul.msk.f32.vlgmr.msrb.gmra.mxu2 %vm199_vm5, %v2740_v57  ;;  %2748 = vmatmul.msk.f32.vlgmr.msrb.gmra.mxu3 %vm199_vm5, %v2740_v57  ;;  %v2789_v57 = vld [vmem:[%s3953_s4 + $0x40] sm:$0xff] }
 0x1d0   :  { %2754 = vmatpush.msk.msra.mxu2 %vm73_vm0, %v3056_v62  ;;  %2756 = vmatpush.msk.msra.mxu3 %vm73_vm0, %v3048_v59  ;;  %v885_v20 = vpop.permute.xlu0 %884  ;;  %v883_v22 = vpop.permute.xlu2 %882  ;;  %v2749_v62 = vld [vmem:[%s3953_s4 + $0x20] sm:$0xff]  ;;  %v765_v59 = vperm.slane %v2758_v9, 0 }
 0x1d1   :  { %v887_v23 = vsel %vm886_vm10, %v883_v22, %v885_v20  ;;  %v754_v24 = vpop.permute.xlu1 %753 }
 0x1d2   :  { %2766 = vmatpush.msk.msrb.mxu3 %vm73_vm0, %v776_v18  ;;  %v758_v25 = vsel %vm757_vm9, %v754_v24, %v756_v10  ;;  %v904_v27 = vmul.f32 %v896_v21, %v887_v23 }
 0x1d3   :  { %v775_v26 = vmul.f32 %v767_v19, %v758_v25 }
 0x1d5   :  { %2764 = vmatpush.msk.msrb.mxu2 %vm73_vm0, %v775_v26 }
 0x1d6   :  { %2751 = vmatmul.msk.f32.vlgmr.msra.gmra.mxu0 %vm199_vm5, %v2749_v62  ;;  %2753 = vmatmul.msk.f32.vlgmr.msra.gmra.mxu1 %vm199_vm5, %v2749_v62 }
 0x1d7   :  { %2755 = vmatmul.msk.f32.vlgmr.msra.gmra.mxu2 %vm199_vm5, %v2749_v62  ;;  %2757 = vmatmul.msk.f32.vlgmr.msra.gmra.mxu3 %vm199_vm5, %v2749_v62 }
 0x1d8   :  { %2774 = vmatpush.msk.msra.mxu2 %vm73_vm0, %v904_v27  ;;  %v1012_v29 = vpop.permute.xlu0 %1011  ;;  %v881_v31 = vpop.permute.xlu2 %880 }
 0x1d9   :  { %v888_v32 = vsel %vm886_vm10, %v881_v31, %v883_v22  ;;  %v752_v33 = vpop.permute.xlu1 %751 }
 0x1da   :  { %v759_v34 = vsel %vm757_vm9, %v752_v33, %v754_v24  ;;  %v760_v35 = vsel %vm757_vm9, %v750_v8, %v752_v33  ;;  %v903_v40 = vmul.f32 %v895_v30, %v888_v32 }
 0x1db   :  { %v773_v36 = vmul.f32 %v765_v59, %v760_v35  ;;  %v774_v37 = vmul.f32 %v766_v28, %v759_v34 }
 0x1dd   :  { %2760 = vmatpush.msk.msrb.mxu0 %vm73_vm0, %v773_v36  ;;  %2762 = vmatpush.msk.msrb.mxu1 %vm73_vm0, %v774_v37 }
 0x1de   :  { %2761 = vmatmul.msk.f32.vlgmr.msrb.gmra.mxu0 %vm199_vm5, %v2759_v38  ;;  %2763 = vmatmul.msk.f32.vlgmr.msrb.gmra.mxu1 %vm199_vm5, %v2759_v38 }
 0x1df   :  { %2765 = vmatmul.msk.f32.vlgmr.msrb.gmra.mxu2 %vm199_vm5, %v2759_v38  ;;  %2767 = vmatmul.msk.f32.vlgmr.msrb.gmra.mxu3 %vm199_vm5, %v2759_v38 }
 0x1e0   :  { %2772 = vmatpush.msk.msra.mxu1 %vm73_vm0, %v903_v40  ;;  %v1010_v45 = vpop.permute.xlu0 %1009  ;;  %v1008_v47 = vpop.permute.xlu2 %1007 }
 0x1e1   :  { %v1017_v48 = vsel %vm1015_vm11, %v1010_v45, %v1012_v29  ;;  %v1018_v49 = vsel %vm1015_vm11, %v1008_v47, %v1010_v45  ;;  %v879_v50 = vpop.permute.xlu1 %878 }
 0x1e2   :  { %v1032_v51 = vmul.f32 %v1024_v41, %v1017_v48  ;;  %v889_v52 = vsel %vm886_vm10, %v879_v50, %v881_v31  ;;  %v890_v53 = vsel %vm886_vm10, %v885_v20, %v879_v50  ;;  %v1031_v60 = vmul.f32 %v1023_v46, %v1018_v49 }
 0x1e3   :  { %v902_v54 = vmul.f32 %v894_v43, %v889_v52  ;;  %v905_v55 = vmul.f32 %v897_v44, %v890_v53 }
 0x1e4   :  { %2782 = vmatpush.msk.msrb.mxu1 %vm73_vm0, %v1032_v51 }
 0x1e5   :  { %2770 = vmatpush.msk.msra.mxu0 %vm73_vm0, %v902_v54  ;;  %2776 = vmatpush.msk.msra.mxu3 %vm73_vm0, %v905_v55 }
 0x1e6   :  { %2771 = vmatmul.msk.f32.vlgmr.msra.gmra.mxu0 %vm199_vm5, %v2769_v56  ;;  %2773 = vmatmul.msk.f32.vlgmr.msra.gmra.mxu1 %vm199_vm5, %v2769_v56 }
 0x1e7   :  { %2775 = vmatmul.msk.f32.vlgmr.msra.gmra.mxu2 %vm199_vm5, %v2769_v56  ;;  %2777 = vmatmul.msk.f32.vlgmr.msra.gmra.mxu3 %vm199_vm5, %v2769_v56 }
 0x1e8   :  { %2780 = vmatpush.msk.msrb.mxu0 %vm73_vm0, %v1031_v60  ;;  %v1137_v2 = vpop.permute.xlu0 %1136  ;;  %v1143_v4 = vpop.permute.xlu2 %1142 }
 0x1e9   :  { %v1148_v5 = vsel %vm1144_vm12, %v1143_v4, %v1137_v2  ;;  %v1014_v6 = vpop.permute.xlu1 %1013 }
 0x1ea   :  { %v1016_v7 = vsel %vm1015_vm11, %v1012_v29, %v1014_v6  ;;  %v1019_v8 = vsel %vm1015_vm11, %v1014_v6, %v1008_v47  ;;  %v1163_v12 = vmul.f32 %v1155_v3, %v1148_v5 }
 0x1eb   :  { %v1033_v9 = vmul.f32 %v1025_v63, %v1016_v7  ;;  %v1034_v10 = vmul.f32 %v1026_v0, %v1019_v8 }
 0x1ed   :  { %2784 = vmatpush.msk.msrb.mxu2 %vm73_vm0, %v1033_v9  ;;  %2786 = vmatpush.msk.msrb.mxu3 %vm73_vm0, %v1034_v10 }
 0x1ee   :  { %2781 = vmatmul.msk.f32.vlgmr.msrb.gmra.mxu0 %vm199_vm5, %v2779_v11  ;;  %2783 = vmatmul.msk.f32.vlgmr.msrb.gmra.mxu1 %vm199_vm5, %v2779_v11 }
 0x1ef   :  { %2785 = vmatmul.msk.f32.vlgmr.msrb.gmra.mxu2 %vm199_vm5, %v2779_v11  ;;  %2787 = vmatmul.msk.f32.vlgmr.msrb.gmra.mxu3 %vm199_vm5, %v2779_v11 }
 0x1f0   :  { %2796 = vmatpush.msk.msra.mxu3 %vm73_vm0, %v1163_v12 }
 0x1f1   :  { %v1141_v14 = vpop.permute.xlu1 %1140 }
 0x1f2   :  { %v1145_v58 = vsel %vm1144_vm12, %v1141_v14, %v1143_v4 }
 0x1f3   :  { %v1162_v15 = vmul.f32 %v1154_v13, %v1145_v58 }
 0x1f5   :  { %2794 = vmatpush.msk.msra.mxu2 %vm73_vm0, %v1162_v15 }
 0x1f7   :  { %2795 = vmatmul.msk.f32.vlgmr.msra.gmra.mxu2 %vm199_vm5, %v2789_v57  ;;  %2797 = vmatmul.msk.f32.vlgmr.msra.gmra.mxu3 %vm199_vm5, %v2789_v57 }
 0x1f9   :  { %v1139_v18 = vpop.permute.xlu1 %1138 }
 0x1fa   :  { %v1146_v19 = vsel %vm1144_vm12, %v1139_v18, %v1141_v14  ;;  %v1147_v20 = vsel %vm1144_vm12, %v1137_v2, %v1139_v18 }
 0x1fb   :  { %v1160_v21 = vmul.f32 %v1152_v16, %v1147_v20  ;;  %v1161_v22 = vmul.f32 %v1153_v17, %v1146_v19 }
 0x1fd   :  { %2790 = vmatpush.msk.msra.mxu0 %vm73_vm0, %v1160_v21  ;;  %2792 = vmatpush.msk.msra.mxu1 %vm73_vm0, %v1161_v22 }
 0x1fe   :  { %2791 = vmatmul.msk.f32.vlgmr.msra.gmra.mxu0 %vm199_vm5, %v2789_v57  ;;  %2793 = vmatmul.msk.f32.vlgmr.msra.gmra.mxu1 %vm199_vm5, %v2789_v57  ;;  %vm1512_vm5 = vcmask 97280  }
 0x215   :  { %v1269_v18 = vpop.permute.xlu2 %1268 }
 0x220   :  { %v272_v25 = vpop.f32.mrf.mxu2 }
 0x22b   :  { %v232_v23 = vpop.f32.mrf.mxu0  ;;  %v252_v24 = vpop.f32.mrf.mxu1 }
 0x232   :  { %v292_v26 = vpop.f32.mrf.mxu3 }
 0x239   :  { %v367_v59 = vpop.f32.mrf.mxu2 }
 0x23a   :  { %v387_v28 = vpop.f32.mrf.mxu3  ;;  %v368_v49 = vadd.f32 %v367_v59, %v272_v25 }
 0x23b   :  { %v327_v62 = vpop.f32.mrf.mxu0  ;;  %v347_v27 = vpop.f32.mrf.mxu1  ;;  %v388_v50 = vadd.f32 %v387_v28, %v292_v26 }
 0x23c   :  { %v328_v51 = vadd.f32 %v327_v62, %v232_v23  ;;  %v348_v52 = vadd.f32 %v347_v27, %v252_v24 }
 0x242   :  { %v492_v31 = vpop.f32.mrf.mxu2 }
 0x243   :  { %v452_v29 = vpop.f32.mrf.mxu0  ;;  %v472_v30 = vpop.f32.mrf.mxu1  ;;  %v517_v53 = vadd.f32 %v492_v31, %v368_v49 }
 0x244   :  { %v515_v55 = vadd.f32 %v452_v29, %v328_v51  ;;  %v516_v56 = vadd.f32 %v472_v30, %v348_v52 }
 0x24a   :  { %v512_v32 = vpop.f32.mrf.mxu3 }
 0x24b   :  { %v581_v33 = vpop.f32.mrf.mxu0  ;;  %v601_v34 = vpop.f32.mrf.mxu1  ;;  %v518_v54 = vadd.f32 %v512_v32, %v388_v50 }
 0x24c   :  { %v644_v63 = vadd.f32 %v581_v33, %v515_v55  ;;  %v645_v0 = vadd.f32 %v601_v34, %v516_v56 }
 0x252   :  { %v621_v35 = vpop.f32.mrf.mxu2  ;;  %v641_v36 = vpop.f32.mrf.mxu3 }
 0x253   :  { %v682_v37 = vpop.f32.mrf.mxu0  ;;  %v702_v38 = vpop.f32.mrf.mxu1  ;;  %v646_v60 = vadd.f32 %v621_v35, %v517_v53  ;;  %v647_v61 = vadd.f32 %v641_v36, %v518_v54 }
 0x254   :  { %v745_v8 = vadd.f32 %v682_v37, %v644_v63  ;;  %v746_v9 = vadd.f32 %v702_v38, %v645_v0 }
 0x25a   :  { %v722_v39 = vpop.f32.mrf.mxu2  ;;  %v742_v40 = vpop.f32.mrf.mxu3 }
 0x25b   :  { %v811_v41 = vpop.f32.mrf.mxu0  ;;  %v831_v42 = vpop.f32.mrf.mxu1  ;;  %v747_v4 = vadd.f32 %v722_v39, %v646_v60  ;;  %v748_v5 = vadd.f32 %v742_v40, %v647_v61 }
 0x25c   :  { %v874_v12 = vadd.f32 %v811_v41, %v745_v8  ;;  %v875_v13 = vadd.f32 %v831_v42, %v746_v9 }
 0x262   :  { %v851_v43 = vpop.f32.mrf.mxu2  ;;  %v871_v44 = vpop.f32.mrf.mxu3 }
 0x263   :  { %v940_v45 = vpop.f32.mrf.mxu0  ;;  %v960_v46 = vpop.f32.mrf.mxu1  ;;  %v876_v10 = vadd.f32 %v851_v43, %v747_v4  ;;  %v877_v11 = vadd.f32 %v871_v44, %v748_v5 }
 0x264   :  { %v1003_v15 = vadd.f32 %v940_v45, %v874_v12  ;;  %v1004_v57 = vadd.f32 %v960_v46, %v875_v13 }
 0x26a   :  { %v980_v47 = vpop.f32.mrf.mxu2  ;;  %v1000_v48 = vpop.f32.mrf.mxu3 }
 0x26b   :  { %v1069_v6 = vpop.f32.mrf.mxu0  ;;  %v1089_v7 = vpop.f32.mrf.mxu1  ;;  %v1005_v14 = vadd.f32 %v980_v47, %v876_v10  ;;  %v1006_v58 = vadd.f32 %v1000_v48, %v877_v11 }
 0x26c   :  { %v1132_v19 = vadd.f32 %v1069_v6, %v1003_v15  ;;  %v1133_v20 = vadd.f32 %v1089_v7, %v1004_v57 }
 0x272   :  { %v1109_v2 = vpop.f32.mrf.mxu2  ;;  %v1129_v3 = vpop.f32.mrf.mxu3 }
 0x273   :  { %v1134_v16 = vadd.f32 %v1109_v2, %v1005_v14  ;;  %v1135_v17 = vadd.f32 %v1129_v3, %v1006_v58 }
 0x27a   :  { %v1238_v21 = vpop.f32.mrf.mxu2  ;;  %v1258_v22 = vpop.f32.mrf.mxu3 }
 0x27b   :  { %v1263_v23 = vadd.f32 %v1238_v21, %v1134_v16  ;;  %v1264_v24 = vadd.f32 %v1258_v22, %v1135_v17  ;;  %v1198_v25 = vpop.f32.mrf.mxu0  ;;  %v1218_v26 = vpop.f32.mrf.mxu1 }
 0x27c   :  { %v1261_v62 = vadd.f32 %v1198_v25, %v1132_v19  ;;  %v1262_v27 = vadd.f32 %v1218_v26, %v1133_v20 }
 0x27d   :  { %v1273_v59 = vadd.f32 %v1269_v18, %v1263_v23  ;;  %v1274_v28 = vadd.f32 %v1269_v18, %v1264_v24 }
 0x27e   :  { %v1271_v29 = vadd.f32 %v1269_v18, %v1261_v62  ;;  %v1272_v32 = vadd.f32 %v1269_v18, %v1262_v27 }
 0x27f   :  { %v1281_v30 = vrot.slane %v1273_v59, 4  ;;  %v1282_v31 = vrot.slane %v1274_v28, 4 }
 0x280   :  { %v1279_v33 = vrot.slane %v1271_v29, 4  ;;  %v1280_v34 = vrot.slane %v1272_v32, 4  ;;  %v1350_v32 = vld [vmem:[%s3955_s6 + $0x8] sm:$0xf] }
 0x281   :  { %1289 = vst [vmem:[#allocation5 + $0x10] sm:$0xf0] %v1281_v30 }
 0x282   :  { %1290 = vst [vmem:[#allocation5 + $0x18] sm:$0xf0] %v1282_v31 }
 0x283   :  { %1293 = vst [vmem:[#allocation5 + $0x30] sm:$0xf] %v1281_v30 }
 0x284   :  { %1294 = vst [vmem:[#allocation5 + $0x38] sm:$0xf] %v1282_v31 }
 0x285   :  { %1287 = vst [vmem:[#allocation5] sm:$0xf0] %v1279_v33 }
 0x286   :  { %1291 = vst [vmem:[#allocation5 + $0x20] sm:$0xf] %v1279_v33 }
 0x287   :  { %1288 = vst [vmem:[#allocation5 + $0x8] sm:$0xf0] %v1280_v34 }
 0x288   :  { %1292 = vst [vmem:[#allocation5 + $0x28] sm:$0xf] %v1280_v34  ;;  %v3350_v44 = vld [vmem:[#allocation5 + $0x10] sm:$0xff] }
 0x289   :  { %v3364_v53 = vld [vmem:[#allocation5 + $0x18] sm:$0xff]  ;;  %v1319_v8 = vmul.f32 %v3350_v44, %v3350_v44 }
 0x28a   :  { %v3336_v37 = vld [vmem:[#allocation5 + $0x30] sm:$0xf]  ;;  %v1320_v10 = vmul.f32 %v3364_v53, %v3364_v53 }
 0x28b   :  { %v3348_v43 = vld [vmem:[#allocation5 + $0x38] sm:$0xf]  ;;  %v1323_v47 = vmul.f32 %v3336_v37, %v3336_v37  ;;  %v1311_v54 = vsel %vm73_vm0, %v3336_v37, 0.0 }
 0x28c   :  { %v3332_v35 = vld [vmem:[#allocation5] sm:$0xff]  ;;  %v1324_v55 = vmul.f32 %v3348_v43, %v3348_v43  ;;  %v1313_v0 = vsel %vm73_vm0, %v3348_v43, 0.0 }
 0x28d   :  { %v3334_v36 = vld [vmem:[#allocation5 + $0x20] sm:$0xf]  ;;  %v1317_v51 = vmul.f32 %v3332_v35, %v3332_v35  ;;  %v1333_v2 = vsel %vm73_vm0, %v1323_v47, 0.0  ;;  %v1349_v47 = vld [vmem:[%s3955_s6] sm:$0xff] }
 0x28e   :  { %v3338_v38 = vld [vmem:[#allocation5 + $0x8] sm:$0xff]  ;;  %v1308_v39 = vsel %vm73_vm0, %v3334_v36, 0.0  ;;  %v1321_v40 = vmul.f32 %v3334_v36, %v3334_v36  ;;  %v1335_v6 = vsel %vm73_vm0, %v1324_v55, 0.0 }
 0x28f   :  { %v1303_v41 = vadd.f32 %v3338_v38, %v3332_v35  ;;  %v3346_v42 = vld [vmem:[#allocation5 + $0x28] sm:$0xf]  ;;  %v1318_v52 = vmul.f32 %v3338_v38, %v3338_v38 }
 0x290   :  { %v1309_v45 = vsel %vm73_vm0, %v3346_v42, 0.0  ;;  %v1322_v46 = vmul.f32 %v3346_v42, %v3346_v42  ;;  %v1330_v48 = vsel %vm73_vm0, %v1321_v40, 0.0 }
 0x291   :  { %v1304_v49 = vadd.f32 %v1303_v41, %v3350_v44  ;;  %v1310_v50 = vadd.f32 %v1309_v45, %v1308_v39  ;;  %v1325_v5 = vadd.f32 %v1318_v52, %v1317_v51  ;;  %v1376_v45 = vld [vmem:[%s3956_s7 + $0x8] sm:$0xf]  ;;  %v1375_v52 = vld [vmem:[%s3956_s7] sm:$0xff] }
 0x292   :  { %v1331_v56 = vsel %vm73_vm0, %v1322_v46, 0.0 }
 0x293   :  { %v1305_v60 = vadd.f32 %v1304_v49, %v3364_v53  ;;  %v1312_v61 = vadd.f32 %v1311_v54, %v1310_v50  ;;  %v1332_v63 = vadd.f32 %v1331_v56, %v1330_v48  ;;  %v1326_v9 = vadd.f32 %v1325_v5, %v1319_v8 }
 0x295   :  { %1306 = vadd.xlane.f32.xlu1 %v1305_v60  ;;  %v1314_v3 = vadd.f32 %v1313_v0, %v1312_v61  ;;  %v1334_v4 = vadd.f32 %v1333_v2, %v1332_v63  ;;  %v1327_v11 = vadd.f32 %v1326_v9, %v1320_v10 }
 0x297   :  { %1315 = vadd.xlane.f32.xlu0 %v1314_v3  ;;  %v1336_v7 = vadd.f32 %v1335_v6, %v1334_v4 }
 0x299   :  { %1337 = vadd.xlane.f32.xlu2 %v1336_v7 }
 0x29f   :  { %1328 = vadd.xlane.f32.xlu0 %v1327_v11 }
 0x308   :  { %v1307_v14 = vpop.xlane.xlu1 %1306 }
 0x309   :  { %v1339_v16 = vmul.f32 0.001953125, %v1307_v14 }
 0x30a   :  { %v1316_v12 = vpop.xlane.xlu0 %1315 }
 0x30b   :  { %v1340_v13 = vmul.f32 0.001953125, %v1316_v12  ;;  %v1343_v20 = vmul.f32 %v1339_v16, %v1339_v16 }
 0x30c   :  { %v1338_v58 = vpop.xlane.xlu2 %1337 }
 0x30d   :  { %v1344_v15 = vmul.f32 %v1340_v13, %v1340_v13  ;;  %v1342_v57 = vmul.f32 0.001953125, %v1338_v58 }
 0x30f   :  { %v1346_v17 = vsub.f32 %v1342_v57, %v1344_v15 }
 0x311   :  { %v1348_v18 = vmax.f32 %v1346_v17, 0.0 }
 0x312   :  { %v1329_v19 = vpop.xlane.xlu0 %1328 }
 0x313   :  { %v1352_v21 = vadd.f32 1e-05, %v1348_v18  ;;  %v1341_v22 = vmul.f32 0.001953125, %v1329_v19 }
 0x315   :  { %2903 = vrsqrt.f32 %v1352_v21  ;;  %v1345_v23 = vsub.f32 %v1341_v22, %v1343_v20  ;;  %vm1369_vm14 = vweird.f32 %v1352_v21 }
 0x317   :  { %v1347_v24 = vmax.f32 %v1345_v23, 0.0 }
 0x319   :  { %v1351_v25 = vadd.f32 1e-05, %v1347_v24 }
 0x31b   :  { %v2904_v26 = vpop.eup %2903  ;;  %2905 = vrsqrt.f32 %v1351_v25  ;;  %vm1359_vm2 = vweird.f32 %v1351_v25 }
 0x31c   :  { %v1364_v62 = vmul.f32 %v2904_v26, %v1352_v21  ;;  %vm1370_vm13 = vweird.f32 %v2904_v26 }
 0x31d   :  { %vm1371_vm15 = vmor %vm1369_vm14, %vm1370_vm13 }
 0x31e   :  { %v1365_v27 = vmul.f32 %v2904_v26, %v1364_v62 }
 0x320   :  { %v1366_v59 = vmul.f32 0.5, %v1365_v27 }
 0x321   :  { %v2906_v28 = vpop.eup %2905 }
 0x322   :  { %v1367_v29 = vsub.f32 1.5, %v1366_v59  ;;  %v1354_v30 = vmul.f32 %v2906_v28, %v1351_v25  ;;  %vm1360_vm1 = vweird.f32 %v2906_v28 }
 0x323   :  { %vm1361_vm3 = vmor %vm1359_vm2, %vm1360_vm1 }
 0x324   :  { %v1355_v31 = vmul.f32 %v2906_v28, %v1354_v30  ;;  %v1368_v33 = vmul.f32 %v2904_v26, %v1367_v29 }
 0x326   :  { %v1356_v34 = vmul.f32 0.5, %v1355_v31  ;;  %v1372_v39 = vsel %vm1371_vm15, %v2904_v26, %v1368_v33 }
 0x327   :  { %v1374_v40 = vmul.f32 %v1372_v39, %v1350_v32 }
 0x328   :  { %v1357_v41 = vsub.f32 1.5, %v1356_v34 }
 0x329   :  { %1388 = vperm.xlu2 %2899, %v1374_v40   ;;  %v1378_v46 = vmul.f32 %v1374_v40, %v1340_v13 }
 0x32a   :  { %v1358_v48 = vmul.f32 %v2906_v28, %v1357_v41 }
 0x32b   :  { %v1380_v49 = vsub.f32 %v1376_v45, %v1378_v46 }
 0x32c   :  { %v1362_v50 = vsel %vm1361_vm3, %v2906_v28, %v1358_v48 }
 0x32d   :  { %1406 = vperm.xlu0 %2900, %v1380_v49   ;;  %v1373_v51 = vmul.f32 %v1362_v50, %v1349_v47 }
 0x32f   :  { %1383 = vperm.xlu1 %2898, %v1373_v51   ;;  %v1377_v54 = vmul.f32 %v1373_v51, %v1339_v16 }
 0x331   :  { %v1379_v55 = vsub.f32 %v1375_v52, %v1377_v54 }
 0x333   :  { %1401 = vperm.xlu2 %2899, %v1379_v55  }
 0x383   :  { %v1389_v56 = vpop.permute.xlu2 %1388 }
 0x384   :  { %v1397_v10 = vmul.f32 %v1389_v56, %v3336_v37  ;;  %v1395_v58 = vmul.f32 %v1389_v56, %v3334_v36 }
 0x38d   :  { %v1402_v2 = vpop.permute.xlu2 %1401 }
 0x3a1   :  { %v1384_v60 = vpop.permute.xlu1 %1383 }
 0x3a2   :  { %v1392_v61 = vmul.f32 %v1384_v60, %v3338_v38  ;;  %v1393_v63 = vmul.f32 %v1384_v60, %v3350_v44  ;;  %v1394_v0 = vmul.f32 %v1384_v60, %v3364_v53  ;;  %v1391_v6 = vmul.f32 %v1384_v60, %v3332_v35  ;;  %v1407_v35 = vpop.permute.xlu0 %1406 }
 0x3a3   :  { %v1396_v53 = vmul.f32 %v1389_v56, %v3346_v42  ;;  %v1415_v12 = vadd.f32 %v1407_v35, %v1397_v10  ;;  %v1398_v42 = vmul.f32 %v1389_v56, %v3348_v43  ;;  %v1413_v37 = vadd.f32 %v1407_v35, %v1395_v58  ;;  %v2662_v58 = vld [vmem:[%s3958_s9] sm:$0xff] }
 0x3a4   :  { %v1410_v3 = vadd.f32 %v1402_v2, %v1392_v61  ;;  %v1411_v4 = vadd.f32 %v1402_v2, %v1393_v63  ;;  %v1412_v5 = vadd.f32 %v1402_v2, %v1394_v0  ;;  %v1409_v38 = vadd.f32 %v1402_v2, %v1391_v6 }
 0x3a5   :  { %v1414_v11 = vadd.f32 %v1407_v35, %v1396_v53  ;;  %v3468_v14 = vmax.f32 %v1415_v12, 0.0  ;;  %v1416_v15 = vadd.f32 %v1407_v35, %v1398_v42  ;;  %v3478_v57 = vmax.f32 %v1413_v37, 0.0 }
 0x3a6   :  { %v3396_v7 = vmax.f32 %v1410_v3, 0.0  ;;  %v3398_v8 = vmax.f32 %v1411_v4, 0.0  ;;  %v3400_v9 = vmax.f32 %v1412_v5, 0.0  ;;  %v3408_v44 = vmax.f32 %v1409_v38, 0.0 }
 0x3a7   :  { %v3466_v13 = vmax.f32 %v1414_v11, 0.0  ;;  %v3480_v16 = vmax.f32 %v1416_v15, 0.0 }
 0x3a8   :  { %1480 = vrot.lane.b32.xlu0 %v3400_v9, %s2961_s2  ;;  %1476 = vrot.lane.b32.xlu1 %v3398_v8, %s2961_s2 }
 0x3a9   :  { %1472 = vrot.lane.b32.xlu2 %v3396_v7, %s2961_s2 }
 0x3b0   :  { %1429 = vrot.lane.b32.xlu0 %v3396_v7, %s2963_s21  ;;  %1468 = vrot.lane.b32.xlu1 %v3408_v44, %s2961_s2 }
 0x3b1   :  { %1433 = vrot.lane.b32.xlu2 %v3398_v8, %s2963_s21 }
 0x3b8   :  { %1711 = vrot.lane.b32.xlu0 %v3398_v8, %s2962_s3  ;;  %1437 = vrot.lane.b32.xlu1 %v3400_v9, %s2963_s21 }
 0x3b9   :  { %1425 = vrot.lane.b32.xlu2 %v3408_v44, %s2963_s21 }
 0x3c0   :  { %1703 = vrot.lane.b32.xlu0 %v3408_v44, %s2962_s3  ;;  %1707 = vrot.lane.b32.xlu1 %v3396_v7, %s2962_s3 }
 0x3c1   :  { %1715 = vrot.lane.b32.xlu2 %v3400_v9, %s2962_s3 }
 0x3c8   :  { %1858 = vrot.lane.b32.xlu0 %v3400_v9, %s2964_s22  ;;  %1854 = vrot.lane.b32.xlu1 %v3398_v8, %s2964_s22 }
 0x3c9   :  { %1850 = vrot.lane.b32.xlu2 %v3396_v7, %s2964_s22 }
 0x3d0   :  { %2090 = vrot.lane.b32.xlu0 %v3408_v44, %s2965_s23  ;;  %1846 = vrot.lane.b32.xlu1 %v3408_v44, %s2964_s22 }
 0x3d1   :  { %2098 = vrot.lane.b32.xlu2 %v3398_v8, %s2965_s23 }
 0x3d8   :  { %2241 = vrot.lane.b32.xlu0 %v3398_v8, %s2966_s24  ;;  %2102 = vrot.lane.b32.xlu1 %v3400_v9, %s2965_s23 }
 0x3d9   :  { %2094 = vrot.lane.b32.xlu2 %v3396_v7, %s2965_s23 }
 0x3e0   :  { %2237 = vrot.lane.b32.xlu0 %v3396_v7, %s2966_s24  ;;  %2233 = vrot.lane.b32.xlu1 %v3408_v44, %s2966_s24 }
 0x3e1   :  { %2245 = vrot.lane.b32.xlu2 %v3400_v9, %s2966_s24 }
 0x3e8   :  { %2388 = vrot.lane.b32.xlu0 %v3400_v9, %s2967_s25  ;;  %2384 = vrot.lane.b32.xlu1 %v3398_v8, %s2967_s25 }
 0x3e9   :  { %2376 = vrot.lane.b32.xlu2 %v3408_v44, %s2967_s25 }
 0x3f0   :  { %2519 = vrot.lane.b32.xlu0 %v3408_v44, %s2968_s26  ;;  %2380 = vrot.lane.b32.xlu1 %v3396_v7, %s2967_s25 }
 0x3f1   :  { %2527 = vrot.lane.b32.xlu2 %v3398_v8, %s2968_s26 }
 0x3f8   :  { %1435 = vrot.lane.b32.xlu0 %v3468_v14, %s2963_s21  ;;  %1474 = vrot.lane.b32.xlu1 %v3466_v13, %s2961_s2 }
 0x3f9   :  { %1478 = vrot.lane.b32.xlu2 %v3468_v14, %s2961_s2 }
 0x400   :  { %1427 = vrot.lane.b32.xlu0 %v3478_v57, %s2963_s21  ;;  %1482 = vrot.lane.b32.xlu1 %v3480_v16, %s2961_s2 }
 0x401   :  { %1470 = vrot.lane.b32.xlu2 %v3478_v57, %s2961_s2 }
 0x403   :  { %v1473_v36 = vpop.permute.xlu2 %1472 }
 0x408   :  { %1713 = vrot.lane.b32.xlu0 %v3468_v14, %s2962_s3  ;;  %1431 = vrot.lane.b32.xlu1 %v3466_v13, %s2963_s21 }
 0x409   :  { %1439 = vrot.lane.b32.xlu2 %v3480_v16, %s2963_s21 }
 0x40b   :  { %v1434_v43 = vpop.permute.xlu2 %1433 }
 0x410   :  { %1860 = vrot.lane.b32.xlu0 %v3480_v16, %s2964_s22  ;;  %1709 = vrot.lane.b32.xlu1 %v3466_v13, %s2962_s3 }
 0x411   :  { %1717 = vrot.lane.b32.xlu2 %v3480_v16, %s2962_s3 }
 0x413   :  { %v1426_v17 = vpop.permute.xlu2 %1425 }
 0x418   :  { %2092 = vrot.lane.b32.xlu0 %v3478_v57, %s2965_s23  ;;  %1705 = vrot.lane.b32.xlu1 %v3478_v57, %s2962_s3 }
 0x419   :  { %1852 = vrot.lane.b32.xlu2 %v3466_v13, %s2964_s22 }
 0x41a   :  { %v1481_v18 = vpop.permute.xlu0 %1480  ;;  %v1477_v19 = vpop.permute.xlu1 %1476 }
 0x41b   :  { %v3508_v20 = vsel %vm177_vm4, %v1477_v19, %v1481_v18  ;;  %v3512_v21 = vsel %vm177_vm4, %v1473_v36, %v1477_v19  ;;  %v1716_v22 = vpop.permute.xlu2 %1715 }
 0x420   :  { %2096 = vrot.lane.b32.xlu0 %v3466_v13, %s2965_s23  ;;  %1856 = vrot.lane.b32.xlu1 %v3468_v14, %s2964_s22 }
 0x421   :  { %1848 = vrot.lane.b32.xlu2 %v3478_v57, %s2964_s22 }
 0x422   :  { %v1430_v23 = vpop.permute.xlu0 %1429  ;;  %v1469_v24 = vpop.permute.xlu1 %1468 }
 0x423   :  { %v3522_v25 = vsel %vm149_vm7, %v1430_v23, %v1434_v43  ;;  %v3526_v26 = vsel %vm149_vm7, %v1426_v17, %v1430_v23  ;;  %v1851_v62 = vpop.permute.xlu2 %1850  ;;  %v3530_v27 = vsel %vm177_vm4, %v1469_v24, %v1473_v36  ;;  %v3534_v59 = vsel %vm177_vm4, %v1481_v18, %v1469_v24  ;;  %v2798_v24 = vld [vmem:[%s3950_s1 + $0x1] ss:$8 sm:$0xf] }
 0x428   :  { %2243 = vrot.lane.b32.xlu0 %v3468_v14, %s2966_s24  ;;  %2104 = vrot.lane.b32.xlu1 %v3480_v16, %s2965_s23 }
 0x429   :  { %2100 = vrot.lane.b32.xlu2 %v3468_v14, %s2965_s23 }
 0x42a   :  { %v1712_v28 = vpop.permute.xlu0 %1711  ;;  %v1438_v29 = vpop.permute.xlu1 %1437 }
 0x42b   :  { %v3544_v30 = vsel %vm398_vm6, %v1712_v28, %v1716_v22  ;;  %v2099_v31 = vpop.permute.xlu2 %2098  ;;  %v3548_v32 = vsel %vm149_vm7, %v1434_v43, %v1438_v29  ;;  %v3552_v33 = vsel %vm149_vm7, %v1438_v29, %v1426_v17 }
 0x430   :  { %2390 = vrot.lane.b32.xlu0 %v3480_v16, %s2967_s25  ;;  %2235 = vrot.lane.b32.xlu1 %v3478_v57, %s2966_s24 }
 0x431   :  { %2247 = vrot.lane.b32.xlu2 %v3480_v16, %s2966_s24 }
 0x432   :  { %v1704_v34 = vpop.permute.xlu0 %1703  ;;  %v1708_v39 = vpop.permute.xlu1 %1707 }
 0x433   :  { %v3562_v40 = vsel %vm398_vm6, %v1716_v22, %v1704_v34  ;;  %v2095_v41 = vpop.permute.xlu2 %2094  ;;  %v3566_v45 = vsel %vm398_vm6, %v1708_v39, %v1712_v28  ;;  %v3570_v46 = vsel %vm398_vm6, %v1704_v34, %v1708_v39  ;;  %v1495_v28 = vperm.slane %v2798_v24, 1 }
 0x434   :  { %v3574_v47 = vsel %vm757_vm9, %v2095_v41, %v2099_v31 }
 0x438   :  { %2521 = vrot.lane.b32.xlu0 %v3478_v57, %s2968_s26  ;;  %2239 = vrot.lane.b32.xlu1 %v3466_v13, %s2966_s24 }
 0x439   :  { %2378 = vrot.lane.b32.xlu2 %v3478_v57, %s2967_s25 }
 0x43a   :  { %v1859_v48 = vpop.permute.xlu0 %1858  ;;  %v1855_v49 = vpop.permute.xlu1 %1854 }
 0x43b   :  { %v2246_v50 = vpop.permute.xlu2 %2245  ;;  %v3584_v51 = vsel %vm527_vm8, %v1855_v49, %v1859_v48  ;;  %v3588_v52 = vsel %vm527_vm8, %v1851_v62, %v1855_v49 }
 0x440   :  { %2525 = vrot.lane.b32.xlu0 %v3466_v13, %s2968_s26  ;;  %2386 = vrot.lane.b32.xlu1 %v3468_v14, %s2967_s25 }
 0x441   :  { %2382 = vrot.lane.b32.xlu2 %v3466_v13, %s2967_s25 }
 0x442   :  { %v2091_v54 = vpop.permute.xlu0 %2090  ;;  %v1847_v55 = vpop.permute.xlu1 %1846 }
 0x443   :  { %v3598_v56 = vsel %vm757_vm9, %v2091_v54, %v2095_v41  ;;  %v2377_v60 = vpop.permute.xlu2 %2376  ;;  %v3602_v61 = vsel %vm527_vm8, %v1847_v55, %v1851_v62  ;;  %v3606_v63 = vsel %vm527_vm8, %v1859_v48, %v1847_v55  ;;  %v1496_v62 = vperm.slane %v2798_v24, 2  ;;  %v2799_v55 = vld [vmem:[%s3957_s8 + $0x8] sm:$0xff] }
 0x448   :  { %2533 = vrot.lane.b32.xlu1 %v3480_v16, %s2968_s26 }
 0x449   :  { %2529 = vrot.lane.b32.xlu2 %v3468_v14, %s2968_s26 }
 0x44a   :  { %v2242_v0 = vpop.permute.xlu0 %2241  ;;  %v2103_v2 = vpop.permute.xlu1 %2102 }
 0x44b   :  { %v3614_v3 = vsel %vm886_vm10, %v2242_v0, %v2246_v50  ;;  %v3616_v4 = vpop.permute.xlu2 %2527  ;;  %v3620_v5 = vsel %vm757_vm9, %v2099_v31, %v2103_v2  ;;  %v3624_v6 = vsel %vm757_vm9, %v2103_v2, %v2091_v54  ;;  %v1503_v54 = vmul.f32 %v1495_v28, %v3530_v27 }
 0x450   :  { %2531 = vrot.lane.b32.xlu1 %v3400_v9, %s2968_s26 }
 0x451   :  { %2523 = vrot.lane.b32.xlu2 %v3396_v7, %s2968_s26  ;;  %s2698_s26 = sshll.u32 %s3959_s10, 4  ;;  %s2699_s26 = int_to_ptr.hbm [resolvable:$true] %s2698_s26 }
 0x452   :  { %v2238_v38 = vpop.permute.xlu0 %2237  ;;  %v2234_v35 = vpop.permute.xlu1 %2233 }
 0x453   :  { %v3632_v53 = vsel %vm886_vm10, %v2238_v38, %v2242_v0  ;;  %v1479_v10 = vpop.permute.xlu2 %1478  ;;  %v3636_v11 = vsel %vm886_vm10, %v2234_v35, %v2238_v38  ;;  %v3640_v12 = vsel %vm886_vm10, %v2246_v50, %v2234_v35  ;;  %v1504_v50 = vmul.f32 %v1496_v62, %v3512_v21 }
 0x454   :  { %v1494_v0 = vperm.slane %v2798_v24, 0 }
 0x458   :  { %2665 = vperm.xlu1 %2898, %v2662_v58   ;;  %v1449_v58 = vld [vmem:[%s3950_s1] ss:$8 sm:$0xf] }
 0x45a   :  { %v2389_v42 = vpop.permute.xlu0 %2388  ;;  %v2385_v37 = vpop.permute.xlu1 %2384 }
 0x45b   :  { %v3647_v15 = vsel %vm1015_vm11, %v2389_v42, %v2377_v60  ;;  %v1471_v36 = vpop.permute.xlu2 %1470  ;;  %v3651_v43 = vsel %vm1015_vm11, %v2385_v37, %v2389_v42 }
 0x462   :  { %v3653_v17 = vpop.permute.xlu0 %2519  ;;  %v2381_v18 = vpop.permute.xlu1 %2380 }
 0x463   :  { %v1440_v19 = vpop.permute.xlu2 %1439  ;;  %v3657_v22 = vsel %vm1015_vm11, %v2381_v18, %v2385_v37  ;;  %v3661_v23 = vsel %vm1015_vm11, %v2377_v60, %v2381_v18  ;;  %v1497_v60 = vperm.slane %v2798_v24, 3 }
 0x46a   :  { %v1436_v29 = vpop.permute.xlu0 %1435  ;;  %v1475_v31 = vpop.permute.xlu1 %1474 }
 0x46b   :  { %v3666_v34 = vpop.permute.xlu2 %1717  ;;  %v1487_v39 = vsel %vm177_vm4, %v1475_v31, %v1479_v10  ;;  %v1489_v41 = vsel %vm177_vm4, %v1471_v36, %v1475_v31  ;;  %v1442_v42 = vsel %vm149_vm7, %v1436_v29, %v1440_v19  ;;  %v1505_v31 = vmul.f32 %v1497_v60, %v3508_v20 }
 0x46c   :  { %v1507_v48 = vmul.f32 %v1495_v28, %v1489_v41  ;;  %v1508_v49 = vmul.f32 %v1496_v62, %v1487_v39  ;;  %v1451_v62 = vperm.slane %v1449_v58, 0  ;;  %v1454_v28 = vperm.slane %v1449_v58, 3 }
 0x46d   :  { %v1452_v20 = vperm.slane %v1449_v58, 1 }
 0x46e   :  { %2802 = vmatpush.msk.msrb.mxu1 %vm73_vm0, %v1507_v48  ;;  %2804 = vmatpush.msk.msrb.mxu2 %vm73_vm0, %v1508_v49  ;;  %v1466_v39 = vmul.f32 %v1454_v28, %v1442_v42  ;;  %v1462_v48 = vmul.f32 %v1454_v28, %v3548_v32 }
 0x470   :  { %1563 = vmatpush.msrb.mxu1 %v1503_v54  ;;  %1583 = vmatpush.msrb.mxu2 %v1504_v50 }
 0x471   :  { %2805 = vmatmul.msk.f32.vlgmr.msrb.gmra.mxu2 %vm1512_vm5, %v2799_v55  ;;  %2803 = vmatmul.msk.f32.vlgmr.msrb.gmra.mxu1 %vm1512_vm5, %v2799_v55 }
 0x472   :  { %v1428_v21 = vpop.permute.xlu0 %1427  ;;  %v1483_v2 = vpop.permute.xlu1 %1482 }
 0x473   :  { %v3681_v27 = vpop.permute.xlu2 %1852  ;;  %v1485_v38 = vsel %vm177_vm4, %v1479_v10, %v1483_v2  ;;  %v1491_v35 = vsel %vm177_vm4, %v1483_v2, %v1471_v36  ;;  %v1448_v37 = vsel %vm149_vm7, %v1440_v19, %v1428_v21  ;;  %v1502_v10 = vmul.f32 %v1494_v0, %v3534_v59  ;;  %v3701_v36 = vld [vmem:[%s3950_s1 + $0x2] ss:$8 sm:$0xf] }
 0x474   :  { %v1506_v18 = vmul.f32 %v1494_v0, %v1491_v35  ;;  %v1509_v24 = vmul.f32 %v1497_v60, %v1485_v38  ;;  %v1463_v41 = vmul.f32 %v1451_v62, %v1448_v37  ;;  %v1459_v19 = vmul.f32 %v1451_v62, %v3552_v33  ;;  %v2817_v62 = vld [vmem:[%s3957_s8 + $0x10] sm:$0xff] }
 0x475   :  { %v1453_v59 = vperm.slane %v1449_v58, 2  ;;  %v1732_v49 = vperm.slane %v3701_v36, 3  ;;  %v1460_v58 = vmul.f32 %v1452_v20, %v3526_v26  ;;  %v1731_v26 = vperm.slane %v3701_v36, 2 }
 0x476   :  { %2800 = vmatpush.msk.msrb.mxu0 %vm73_vm0, %v1506_v18  ;;  %2806 = vmatpush.msk.msrb.mxu3 %vm73_vm0, %v1509_v24  ;;  %v1729_v28 = vperm.slane %v3701_v36, 0 }
 0x477   :  { %v1740_v42 = vmul.f32 %v1732_v49, %v3544_v30  ;;  %v1739_v24 = vmul.f32 %v1731_v26, %v3566_v45 }
 0x478   :  { %1543 = vmatpush.msrb.mxu0 %v1502_v10  ;;  %1603 = vmatpush.msrb.mxu3 %v1505_v31  ;;  %v1730_v31 = vperm.slane %v3701_v36, 1  ;;  %v2826_v36 = vld [vmem:[%s3950_s1 + $0x3] ss:$8 sm:$0xf] }
 0x479   :  { %2807 = vmatmul.msk.f32.vlgmr.msrb.gmra.mxu3 %vm1512_vm5, %v2799_v55  ;;  %2801 = vmatmul.msk.f32.vlgmr.msrb.gmra.mxu0 %vm1512_vm5, %v2799_v55  ;;  %v1461_v55 = vmul.f32 %v1453_v59, %v3522_v25 }
 0x47a   :  { %2808 = vmatpush.msk.msra.mxu0 %vm73_vm0, %v1463_v41  ;;  %2814 = vmatpush.msk.msra.mxu3 %vm73_vm0, %v1466_v39  ;;  %v1714_v50 = vpop.permute.xlu0 %1713  ;;  %v1432_v54 = vpop.permute.xlu1 %1431 }
 0x47b   :  { %v1720_v33 = vsel %vm398_vm6, %v1714_v50, %v3666_v34  ;;  %v1849_v60 = vpop.permute.xlu2 %1848  ;;  %v1444_v32 = vsel %vm149_vm7, %v1432_v54, %v1436_v29  ;;  %v1446_v0 = vsel %vm149_vm7, %v1428_v21, %v1432_v54  ;;  %v1467_v29 = vld [vmem:[%s3957_s8] sm:$0xff]  ;;  %v1738_v54 = vmul.f32 %v1730_v31, %v3570_v46 }
 0x47c   :  { %1638 = vmatpush.msra.mxu0 %v1459_v19  ;;  %1698 = vmatpush.msra.mxu3 %v1462_v48  ;;  %v1744_v2 = vmul.f32 %v1732_v49, %v1720_v33  ;;  %v1464_v38 = vmul.f32 %v1452_v20, %v1446_v0  ;;  %v1465_v35 = vmul.f32 %v1453_v59, %v1444_v32  ;;  %v1872_v33 = vperm.slane %v2826_v36, 0 }
 0x47d   :  { %v1867_v59 = vsel %vm527_vm8, %v1849_v60, %v3681_v27  ;;  %v1873_v32 = vperm.slane %v2826_v36, 1 }
 0x47e   :  { %2810 = vmatpush.msk.msra.mxu1 %vm73_vm0, %v1464_v38  ;;  %2812 = vmatpush.msk.msra.mxu2 %vm73_vm0, %v1465_v35 }
 0x47f   :  { %2824 = vmatpush.msk.msrb.mxu3 %vm73_vm0, %v1744_v2  ;;  %v1874_v2 = vperm.slane %v2826_v36, 2  ;;  %v1881_v35 = vmul.f32 %v1873_v32, %v3602_v61  ;;  %v2845_v61 = vld [vmem:[%s3950_s1 + $0x5] ss:$8 sm:$0xf] }
 0x480   :  { %1658 = vmatpush.msra.mxu1 %v1460_v58  ;;  %1678 = vmatpush.msra.mxu2 %v1461_v55 }
 0x481   :  { %1837 = vmatpush.msrb.mxu3 %v1740_v42  ;;  %2813 = vmatmul.msk.f32.vlgmr.msra.gmra.mxu2 %vm1512_vm5, %v1467_v29 }
 0x482   :  { %v1861_v25 = vpop.permute.xlu0 %1860  ;;  %v1710_v21 = vpop.permute.xlu1 %1709  ;;  %2815 = vmatmul.msk.f32.vlgmr.msra.gmra.mxu3 %vm1512_vm5, %v1467_v29  ;;  %2809 = vmatmul.msk.f32.vlgmr.msra.gmra.mxu0 %vm1512_vm5, %v1467_v29 }
 0x483   :  { %v3730_v37 = vpop.permute.xlu2 %2100  ;;  %v1722_v30 = vsel %vm398_vm6, %v1710_v21, %v1714_v50  ;;  %2811 = vmatmul.msk.f32.vlgmr.msra.gmra.mxu1 %vm1512_vm5, %v1467_v29  ;;  %v1869_v49 = vsel %vm527_vm8, %v1861_v25, %v1849_v60  ;;  %v1737_v50 = vmul.f32 %v1729_v28, %v3562_v40  ;;  %v1875_v60 = vperm.slane %v2826_v36, 3 }
 0x484   :  { %v1743_v18 = vmul.f32 %v1731_v26, %v1722_v30  ;;  %v1884_v0 = vmul.f32 %v1872_v33, %v1869_v49  ;;  %v1880_v40 = vmul.f32 %v1872_v33, %v3606_v63  ;;  %v1882_v63 = vmul.f32 %v1874_v2, %v3588_v52  ;;  %v2865_v49 = vld [vmem:[%s3950_s1 + $0x7] ss:$8 sm:$0xf] }
 0x485   :  { %v2116_v52 = vperm.slane %v2845_v61, 0  ;;  %v2405_v33 = vperm.slane %v2865_v49, 3 }
 0x486   :  { %2822 = vmatpush.msk.msrb.mxu2 %vm73_vm0, %v1743_v18 }
 0x488   :  { %1817 = vmatpush.msrb.mxu2 %v1739_v24  ;;  %v2119_v24 = vperm.slane %v2845_v61, 3 }
 0x489   :  { %2823 = vmatmul.msk.f32.vlgmr.msrb.gmra.mxu2 %vm1512_vm5, %v2817_v62 }
 0x48a   :  { %v3743_v10 = vpop.permute.xlu0 %2092  ;;  %v1706_v39 = vpop.permute.xlu1 %1705  ;;  %2825 = vmatmul.msk.f32.vlgmr.msrb.gmra.mxu3 %vm1512_vm5, %v2817_v62 }
 0x48b   :  { %v3746_v41 = vpop.permute.xlu2 %2247  ;;  %v1724_v45 = vsel %vm398_vm6, %v1706_v39, %v1710_v21  ;;  %v1726_v19 = vsel %vm398_vm6, %v3666_v34, %v1706_v39  ;;  %v1885_v34 = vmul.f32 %v1873_v32, %v1867_v59  ;;  %v2117_v21 = vperm.slane %v2845_v61, 1 }
 0x48c   :  { %v1741_v48 = vmul.f32 %v1729_v28, %v1726_v19  ;;  %v1742_v20 = vmul.f32 %v1730_v31, %v1724_v45  ;;  %v2124_v31 = vmul.f32 %v2116_v52, %v3598_v56 }
 0x48e   :  { %2818 = vmatpush.msk.msrb.mxu0 %vm73_vm0, %v1741_v48  ;;  %2820 = vmatpush.msk.msrb.mxu1 %vm73_vm0, %v1742_v20  ;;  %v2127_v48 = vmul.f32 %v2119_v24, %v3624_v6 }
 0x490   :  { %1777 = vmatpush.msrb.mxu0 %v1737_v50  ;;  %1797 = vmatpush.msrb.mxu1 %v1738_v54 }
 0x491   :  { %2819 = vmatmul.msk.f32.vlgmr.msrb.gmra.mxu0 %vm1512_vm5, %v2817_v62  ;;  %2821 = vmatmul.msk.f32.vlgmr.msrb.gmra.mxu1 %vm1512_vm5, %v2817_v62 }
 0x492   :  { %2828 = vmatpush.msk.msra.mxu0 %vm73_vm0, %v1884_v0  ;;  %2830 = vmatpush.msk.msra.mxu1 %vm73_vm0, %v1885_v34  ;;  %v2097_v46 = vpop.permute.xlu0 %2096  ;;  %v1857_v38 = vpop.permute.xlu1 %1856 }
 0x493   :  { %v3771_v58 = vpop.permute.xlu2 %2378  ;;  %v1863_v55 = vsel %vm527_vm8, %v1857_v38, %v1861_v25  ;;  %v1865_v29 = vsel %vm527_vm8, %v3681_v27, %v1857_v38  ;;  %v2827_v27 = vld [vmem:[%s3957_s8 + $0x18] sm:$0xff]  ;;  %v1883_v25 = vmul.f32 %v1875_v60, %v3584_v51  ;;  %v2118_v51 = vperm.slane %v2845_v61, 2 }
 0x494   :  { %v1886_v42 = vmul.f32 %v1874_v2, %v1865_v29  ;;  %v1887_v26 = vmul.f32 %v1875_v60, %v1863_v55  ;;  %1920 = vmatpush.msra.mxu0 %v1880_v40  ;;  %1940 = vmatpush.msra.mxu1 %v1881_v35  ;;  %v3882_v61 = vld [vmem:[%s3950_s1 + $0x20] ss:$8 sm:$0xf] }
 0x495   :  { %v2126_v56 = vmul.f32 %v2118_v51, %v3620_v5 }
 0x496   :  { %2837 = vmatpush.msk.msrb.mxu0 %vm73_vm0, %v3478_v57  ;;  %2839 = vmatpush.msk.msrb.mxu1 %vm73_vm0, %v3466_v13  ;;  %v2111_v57 = vsel %vm757_vm9, %v3743_v10, %v2097_v46  ;;  %v2109_v13 = vsel %vm757_vm9, %v2097_v46, %v3730_v37  ;;  %v2413_v46 = vmul.f32 %v2405_v33, %v3647_v15 }
 0x497   :  { %2832 = vmatpush.msk.msra.mxu2 %vm73_vm0, %v1886_v42  ;;  %2834 = vmatpush.msk.msra.mxu3 %vm73_vm0, %v1887_v26  ;;  %v2128_v30 = vmul.f32 %v2116_v52, %v2111_v57  ;;  %v2129_v62 = vmul.f32 %v2117_v21, %v2109_v13  ;;  %v2402_v42 = vperm.slane %v2865_v49, 0  ;;  %v2856_v26 = vld [vmem:[%s3957_s8 + $0x30] sm:$0xff]  ;;  %v2403_v52 = vperm.slane %v2865_v49, 1 }
 0x498   :  { %2021 = vmatpush.msrb.mxu0 %v3408_v44  ;;  %2041 = vmatpush.msrb.mxu1 %v3396_v7 }
 0x499   :  { %1960 = vmatpush.msra.mxu2 %v1882_v63  ;;  %1980 = vmatpush.msra.mxu3 %v1883_v25  ;;  %v2545_v25 = vperm.slane %v3882_v61, 0 }
 0x49a   :  { %2829 = vmatmul.msk.f32.vlgmr.msra.gmra.mxu0 %vm1512_vm5, %v2827_v27  ;;  %2831 = vmatmul.msk.f32.vlgmr.msra.gmra.mxu1 %vm1512_vm5, %v2827_v27  ;;  %v2244_v18 = vpop.permute.xlu0 %2243  ;;  %v2105_v44 = vpop.permute.xlu1 %2104 }
 0x49b   :  { %2833 = vmatmul.msk.f32.vlgmr.msra.gmra.mxu2 %vm1512_vm5, %v2827_v27  ;;  %2835 = vmatmul.msk.f32.vlgmr.msra.gmra.mxu3 %vm1512_vm5, %v2827_v27  ;;  %v2107_v7 = vsel %vm757_vm9, %v3730_v37, %v2105_v44  ;;  %v2113_v28 = vsel %vm757_vm9, %v2105_v44, %v3743_v10  ;;  %v3816_v39 = vpop.permute.xlu2 %2382  ;;  %v2855_v37 = vld [vmem:[%s3950_s1 + $0x6] ss:$8 sm:$0xf]  ;;  %v2410_v27 = vmul.f32 %v2402_v42, %v3661_v23 }
 0x49c   :  { %2841 = vmatpush.msk.msrb.mxu2 %vm73_vm0, %v3468_v14  ;;  %2843 = vmatpush.msk.msrb.mxu3 %vm73_vm0, %v3480_v16  ;;  %v2130_v45 = vmul.f32 %v2118_v51, %v2107_v7  ;;  %v2125_v14 = vmul.f32 %v2117_v21, %v3574_v47  ;;  %v2131_v19 = vmul.f32 %v2119_v24, %v2113_v28  ;;  %v2836_v16 = vld [vmem:[%s3957_s8 + $0x20] sm:$0xff]  ;;  %v2261_v10 = vperm.slane %v2855_v37, 2  ;;  %v2866_v7 = vld [vmem:[%s3957_s8 + $0x38] sm:$0xff] }
 0x49d   :  { %2847 = vmatpush.msk.msra.mxu0 %vm73_vm0, %v2128_v30  ;;  %2849 = vmatpush.msk.msra.mxu1 %vm73_vm0, %v2129_v62  ;;  %v2250_v47 = vsel %vm886_vm10, %v2244_v18, %v3746_v41  ;;  %v2260_v32 = vperm.slane %v2855_v37, 1  ;;  %v2259_v34 = vperm.slane %v2855_v37, 0  ;;  %v2397_v55 = vsel %vm1015_vm11, %v3771_v58, %v3816_v39 }
 0x49e   :  { %2061 = vmatpush.msrb.mxu2 %v3398_v8  ;;  %2081 = vmatpush.msrb.mxu3 %v3400_v9  ;;  %v2262_v8 = vperm.slane %v2855_v37, 3  ;;  %v2273_v9 = vmul.f32 %v2261_v10, %v2250_v47  ;;  %v2269_v36 = vmul.f32 %v2261_v10, %v3614_v3  ;;  %v2411_v28 = vmul.f32 %v2403_v52, %v3657_v22 }
 0x49f   :  { %2164 = vmatpush.msra.mxu0 %v2124_v31  ;;  %2184 = vmatpush.msra.mxu1 %v2125_v14  ;;  %v2267_v29 = vmul.f32 %v2259_v34, %v3636_v11  ;;  %v2268_v15 = vmul.f32 %v2260_v32, %v3632_v53  ;;  %v2404_v11 = vperm.slane %v2865_v49, 2 }
 0x4a0   :  { %2851 = vmatpush.msk.msra.mxu2 %vm73_vm0, %v2130_v45  ;;  %2853 = vmatpush.msk.msra.mxu3 %vm73_vm0, %v2131_v19  ;;  %v2270_v50 = vmul.f32 %v2262_v8, %v3640_v12  ;;  %v2548_v45 = vperm.slane %v3882_v61, 3 }
 0x4a1   :  { %v2412_v24 = vmul.f32 %v2404_v11, %v3651_v43  ;;  %v2547_v43 = vperm.slane %v3882_v61, 2 }
 0x4a2   :  { %2204 = vmatpush.msra.mxu2 %v2126_v56  ;;  %2838 = vmatmul.msk.f32.vlgmr.msrb.gmra.mxu0 %vm1512_vm5, %v2836_v16  ;;  %v2391_v5 = vpop.permute.xlu0 %2390  ;;  %v2236_v20 = vpop.permute.xlu1 %2235 }
 0x4a3   :  { %2224 = vmatpush.msra.mxu3 %v2127_v48  ;;  %2840 = vmatmul.msk.f32.vlgmr.msrb.gmra.mxu1 %vm1512_vm5, %v2836_v16  ;;  %v2256_v6 = vsel %vm886_vm10, %v3746_v41, %v2236_v20  ;;  %v3848_v54 = vpop.permute.xlu2 %2529  ;;  %v2846_v41 = vld [vmem:[%s3957_s8 + $0x28] sm:$0xff]  ;;  %v2399_v3 = vsel %vm1015_vm11, %v2391_v5, %v3771_v58  ;;  %v2414_v58 = vmul.f32 %v2402_v42, %v2397_v55  ;;  %v2876_v48 = vld [vmem:[%s3957_s8 + $0x40] sm:$0xff]  ;;  %s2969_s8 = smov [#allocation5]  }
 0x4a4   :  { %2842 = vmatmul.msk.f32.vlgmr.msrb.gmra.mxu2 %vm1512_vm5, %v2836_v16  ;;  %2844 = vmatmul.msk.f32.vlgmr.msrb.gmra.mxu3 %vm1512_vm5, %v2836_v16  ;;  %v2274_v59 = vmul.f32 %v2262_v8, %v2256_v6  ;;  %v2417_v12 = vmul.f32 %v2405_v33, %v2399_v3  ;;  %s2696_s23 = sshll.u32 %s2969_s8, 4  ;;  %s2697_s23 = int_to_ptr.vmem [resolvable:$true] %s2696_s23 }
 0x4a5   :  { %2861 = vmatpush.msk.msrb.mxu2 %vm73_vm0, %v2273_v9 }
 0x4a6   :  { %2863 = vmatpush.msk.msrb.mxu3 %vm73_vm0, %v2274_v59 }
 0x4a7   :  { %2347 = vmatpush.msrb.mxu2 %v2269_v36 }
 0x4a8   :  { %2367 = vmatpush.msrb.mxu3 %v2270_v50 }
 0x4aa   :  { %2848 = vmatmul.msk.f32.vlgmr.msra.gmra.mxu0 %vm1512_vm5, %v2846_v41  ;;  %v3859_v0 = vpop.permute.xlu0 %2521  ;;  %v2240_v2 = vpop.permute.xlu1 %2239 }
 0x4ab   :  { %2850 = vmatmul.msk.f32.vlgmr.msra.gmra.mxu1 %vm1512_vm5, %v2846_v41  ;;  %v2252_v60 = vsel %vm886_vm10, %v2240_v2, %v2244_v18  ;;  %v2254_v40 = vsel %vm886_vm10, %v2236_v20, %v2240_v2  ;;  %v2524_v63 = vpop.permute.xlu2 %2523 }
 0x4ac   :  { %2852 = vmatmul.msk.f32.vlgmr.msra.gmra.mxu2 %vm1512_vm5, %v2846_v41  ;;  %2854 = vmatmul.msk.f32.vlgmr.msra.gmra.mxu3 %vm1512_vm5, %v2846_v41  ;;  %v2271_v38 = vmul.f32 %v2259_v34, %v2254_v40  ;;  %v2272_v35 = vmul.f32 %v2260_v32, %v2252_v60  ;;  %v2539_v13 = vsel %vm1144_vm12, %v3653_v17, %v2524_v63 }
 0x4ad   :  { %2873 = vmatpush.msk.msra.mxu3 %vm73_vm0, %v2417_v12  ;;  %v2553_v62 = vmul.f32 %v2545_v25, %v2539_v13  ;;  %v2537_v14 = vsel %vm1144_vm12, %v2524_v63, %v3616_v4 }
 0x4ae   :  { %2857 = vmatpush.msk.msrb.mxu0 %vm73_vm0, %v2271_v38  ;;  %2859 = vmatpush.msk.msrb.mxu1 %vm73_vm0, %v2272_v35 }
 0x4af   :  { %2510 = vmatpush.msra.mxu3 %v2413_v46 }
 0x4b0   :  { %2307 = vmatpush.msrb.mxu0 %v2267_v29  ;;  %2327 = vmatpush.msrb.mxu1 %v2268_v15 }
 0x4b2   :  { %2858 = vmatmul.msk.f32.vlgmr.msrb.gmra.mxu0 %vm1512_vm5, %v2856_v26  ;;  %v2526_v53 = vpop.permute.xlu0 %2525  ;;  %v2387_v57 = vpop.permute.xlu1 %2386 }
 0x4b3   :  { %2860 = vmatmul.msk.f32.vlgmr.msrb.gmra.mxu1 %vm1512_vm5, %v2856_v26  ;;  %2867 = vmatpush.msk.msra.mxu0 %vm73_vm0, %v2414_v58  ;;  %v2540_v23 = vsel %vm1144_vm12, %v3859_v0, %v2526_v53  ;;  %v2393_v21 = vsel %vm1015_vm11, %v2387_v57, %v2391_v5  ;;  %v2395_v30 = vsel %vm1015_vm11, %v3816_v39, %v2387_v57  ;;  %v2546_v39 = vperm.slane %v3882_v61, 1 }
 0x4b4   :  { %2862 = vmatmul.msk.f32.vlgmr.msrb.gmra.mxu2 %vm1512_vm5, %v2856_v26  ;;  %2864 = vmatmul.msk.f32.vlgmr.msrb.gmra.mxu3 %vm1512_vm5, %v2856_v26  ;;  %v2557_v51 = vmul.f32 %v2545_v25, %v2540_v23  ;;  %v2416_v18 = vmul.f32 %v2404_v11, %v2393_v21  ;;  %v2415_v44 = vmul.f32 %v2403_v52, %v2395_v30 }
 0x4b5   :  { %2450 = vmatpush.msra.mxu0 %v2410_v27  ;;  %v2538_v31 = vsel %vm1144_vm12, %v2526_v53, %v3848_v54  ;;  %v2554_v56 = vmul.f32 %v2546_v39, %v2537_v14 }
 0x4b6   :  { %2871 = vmatpush.msk.msra.mxu2 %vm73_vm0, %v2416_v18  ;;  %2869 = vmatpush.msk.msra.mxu1 %vm73_vm0, %v2415_v44  ;;  %v2558_v22 = vmul.f32 %v2546_v39, %v2538_v31 }
 0x4b7   :  { %2877 = vmatpush.msk.msrb.mxu0 %vm73_vm0, %v2557_v51 }
 0x4b8   :  { %2490 = vmatpush.msra.mxu2 %v2412_v24  ;;  %2470 = vmatpush.msra.mxu1 %v2411_v28 }
 0x4b9   :  { %2593 = vmatpush.msrb.mxu0 %v2553_v62 }
 0x4ba   :  { %2868 = vmatmul.msk.f32.vlgmr.msra.gmra.mxu0 %vm1512_vm5, %v2866_v7  ;;  %v2534_v37 = vpop.permute.xlu1 %2533  ;;  %2879 = vmatpush.msk.msrb.mxu1 %vm73_vm0, %v2558_v22 }
 0x4bb   :  { %2870 = vmatmul.msk.f32.vlgmr.msra.gmra.mxu1 %vm1512_vm5, %v2866_v7  ;;  %v2536_v19 = vsel %vm1144_vm12, %v3848_v54, %v2534_v37  ;;  %v2542_v16 = vsel %vm1144_vm12, %v2534_v37, %v3859_v0 }
 0x4bc   :  { %2872 = vmatmul.msk.f32.vlgmr.msra.gmra.mxu2 %vm1512_vm5, %v2866_v7  ;;  %2874 = vmatmul.msk.f32.vlgmr.msra.gmra.mxu3 %vm1512_vm5, %v2866_v7  ;;  %v2559_v47 = vmul.f32 %v2547_v43, %v2536_v19  ;;  %v2560_v10 = vmul.f32 %v2548_v45, %v2542_v16 }
 0x4bd   :  { %2613 = vmatpush.msrb.mxu1 %v2554_v56 }
 0x4be   :  { %2881 = vmatpush.msk.msrb.mxu2 %vm73_vm0, %v2559_v47  ;;  %2883 = vmatpush.msk.msrb.mxu3 %vm73_vm0, %v2560_v10 }
 0x4c2   :  { %2878 = vmatmul.msk.f32.vlgmr.msrb.gmra.mxu0 %vm1512_vm5, %v2876_v48  ;;  %v2532_v8 = vpop.permute.xlu1 %2531 }
 0x4c3   :  { %2880 = vmatmul.msk.f32.vlgmr.msrb.gmra.mxu1 %vm1512_vm5, %v2876_v48  ;;  %v2535_v9 = vsel %vm1144_vm12, %v3616_v4, %v2532_v8  ;;  %v2541_v5 = vsel %vm1144_vm12, %v2532_v8, %v3653_v17 }
 0x4c4   :  { %v2555_v20 = vmul.f32 %v2547_v43, %v2535_v9  ;;  %v2556_v6 = vmul.f32 %v2548_v45, %v2541_v5 }
 0x4c6   :  { %2633 = vmatpush.msrb.mxu2 %v2555_v20  ;;  %2653 = vmatpush.msrb.mxu3 %v2556_v6 }
 0x4c7   :  { %2882 = vmatmul.msk.f32.vlgmr.msrb.gmra.mxu2 %vm1512_vm5, %v2876_v48  ;;  %2884 = vmatmul.msk.f32.vlgmr.msrb.gmra.mxu3 %vm1512_vm5, %v2876_v48 }
 0x4ca   :  { %v2666_v37 = vpop.permute.xlu1 %2665 }
 0x4ee   :  { %v1565_v59 = vpop.f32.mrf.mxu1 }
 0x4f4   :  { %v1585_v49 = vpop.f32.mrf.mxu2 }
 0x4f6   :  { %v1545_v36 = vpop.f32.mrf.mxu0 }
 0x4fc   :  { %v1605_v50 = vpop.f32.mrf.mxu3 }
 0x4ff   :  { %v1640_v54 = vpop.f32.mrf.mxu0 }
 0x500   :  { %v1660_v41 = vpop.f32.mrf.mxu1  ;;  %v1641_v61 = vadd.f32 %v1640_v54, %v1545_v36 }
 0x501   :  { %v1661_v58 = vadd.f32 %v1660_v41, %v1565_v59 }
 0x504   :  { %v1680_v3 = vpop.f32.mrf.mxu2 }
 0x505   :  { %v1700_v4 = vpop.f32.mrf.mxu3  ;;  %v1681_v18 = vadd.f32 %v1680_v3, %v1585_v49 }
 0x506   :  { %v1701_v44 = vadd.f32 %v1700_v4, %v1605_v50 }
 0x50c   :  { %v1819_v1 = vpop.f32.mrf.mxu2 }
 0x50d   :  { %v1839_v17 = vpop.f32.mrf.mxu3  ;;  %v1844_v31 = vadd.f32 %v1819_v1, %v1681_v18 }
 0x50e   :  { %v1779_v33 = vpop.f32.mrf.mxu0  ;;  %v1799_v32 = vpop.f32.mrf.mxu1  ;;  %v1845_v39 = vadd.f32 %v1839_v17, %v1701_v44 }
 0x50f   :  { %v1842_v63 = vadd.f32 %v1779_v33, %v1641_v61  ;;  %v1843_v11 = vadd.f32 %v1799_v32, %v1661_v58 }
 0x517   :  { %v1922_v34 = vpop.f32.mrf.mxu0  ;;  %v1942_v12 = vpop.f32.mrf.mxu1 }
 0x518   :  { %v1985_v27 = vadd.f32 %v1922_v34, %v1842_v63  ;;  %v1986_v25 = vadd.f32 %v1942_v12, %v1843_v11 }
 0x51e   :  { %v1962_v0 = vpop.f32.mrf.mxu2  ;;  %v1982_v2 = vpop.f32.mrf.mxu3 }
 0x51f   :  { %v2023_v60 = vpop.f32.mrf.mxu0  ;;  %v1987_v19 = vadd.f32 %v1962_v0, %v1844_v31  ;;  %v1988_v16 = vadd.f32 %v1982_v2, %v1845_v39 }
 0x520   :  { %v2043_v40 = vpop.f32.mrf.mxu1  ;;  %v2086_v52 = vadd.f32 %v2023_v60, %v1985_v27 }
 0x521   :  { %v2087_v13 = vadd.f32 %v2043_v40, %v1986_v25 }
 0x527   :  { %v2063_v46 = vpop.f32.mrf.mxu2  ;;  %v2083_v38 = vpop.f32.mrf.mxu3 }
 0x528   :  { %v2166_v35 = vpop.f32.mrf.mxu0  ;;  %v2186_v55 = vpop.f32.mrf.mxu1  ;;  %v2088_v8 = vadd.f32 %v2063_v46, %v1987_v19  ;;  %v2089_v9 = vadd.f32 %v2083_v38, %v1988_v16 }
 0x529   :  { %v2229_v51 = vadd.f32 %v2166_v35, %v2086_v52  ;;  %v2230_v30 = vadd.f32 %v2186_v55, %v2087_v13 }
 0x52f   :  { %v2206_v29 = vpop.f32.mrf.mxu2  ;;  %v2226_v42 = vpop.f32.mrf.mxu3 }
 0x530   :  { %v2309_v26 = vpop.f32.mrf.mxu0  ;;  %v2329_v15 = vpop.f32.mrf.mxu1  ;;  %v2231_v6 = vadd.f32 %v2206_v29, %v2088_v8  ;;  %v2232_v36 = vadd.f32 %v2226_v42, %v2089_v9 }
 0x531   :  { %v2372_v24 = vadd.f32 %v2309_v26, %v2229_v51  ;;  %v2373_v62 = vadd.f32 %v2329_v15, %v2230_v30 }
 0x537   :  { %v2349_v23 = vpop.f32.mrf.mxu2  ;;  %v2369_v21 = vpop.f32.mrf.mxu3 }
 0x538   :  { %v2452_v53 = vpop.f32.mrf.mxu0  ;;  %v2472_v57 = vpop.f32.mrf.mxu1  ;;  %v2374_v59 = vadd.f32 %v2349_v23, %v2231_v6  ;;  %v2375_v49 = vadd.f32 %v2369_v21, %v2232_v36 }
 0x539   :  { %v2515_v7 = vadd.f32 %v2452_v53, %v2372_v24  ;;  %v2516_v28 = vadd.f32 %v2472_v57, %v2373_v62 }
 0x53f   :  { %v2492_v56 = vpop.f32.mrf.mxu2  ;;  %v2512_v47 = vpop.f32.mrf.mxu3 }
 0x540   :  { %v2595_v43 = vpop.f32.mrf.mxu0  ;;  %v2615_v45 = vpop.f32.mrf.mxu1  ;;  %v2517_v50 = vadd.f32 %v2492_v56, %v2374_v59  ;;  %v2518_v54 = vadd.f32 %v2512_v47, %v2375_v49 }
 0x541   :  { %v2658_v14 = vadd.f32 %v2595_v43, %v2515_v7  ;;  %v2659_v22 = vadd.f32 %v2615_v45, %v2516_v28 }
 0x543   :  { %v2668_v10 = vadd.f32 %v2666_v37, %v2658_v14  ;;  %v2669_v48 = vadd.f32 %v2666_v37, %v2659_v22 }
 0x545   :  { %v2676_v5 = vrot.slane %v2668_v10, 4  ;;  %v2677_v20 = vrot.slane %v2669_v48, 4 }
 0x547   :  { %2684 = vst [vmem:[#allocation5 + $0x20] sm:$0xf0] %v2676_v5 }
 0x548   :  { %2688 = vst [vmem:[#allocation5 + $0x40] sm:$0xf] %v2676_v5 }
 0x549   :  { %2685 = vst [vmem:[#allocation5 + $0x28] sm:$0xf0] %v2677_v20 }
 0x54a   :  { %2689 = vst [vmem:[#allocation5 + $0x48] sm:$0xf] %v2677_v20  ;;  %v2635_v41 = vpop.f32.mrf.mxu2  ;;  %v2655_v3 = vpop.f32.mrf.mxu3 }
 0x54b   :  { %v2660_v4 = vadd.f32 %v2635_v41, %v2517_v50  ;;  %v2661_v33 = vadd.f32 %v2655_v3, %v2518_v54 }
 0x54d   :  { %v2670_v32 = vadd.f32 %v2666_v37, %v2660_v4  ;;  %v2671_v1 = vadd.f32 %v2666_v37, %v2661_v33 }
 0x54f   :  { %v2678_v17 = vrot.slane %v2670_v32, 4  ;;  %v2679_v34 = vrot.slane %v2671_v1, 4 }
 0x551   :  { %2686 = vst [vmem:[#allocation5 + $0x30] sm:$0xf0] %v2678_v17 }
 0x552   :  { %2690 = vst [vmem:[#allocation5 + $0x50] sm:$0xf] %v2678_v17 }
 0x553   :  { %2687 = vst [vmem:[#allocation5 + $0x38] sm:$0xf0] %v2679_v34 }
 0x554   :  { %2691 = vst [vmem:[#allocation5 + $0x58] sm:$0xf] %v2679_v34 }
 0x555   :  { %2704 = dma.vmem_to_hbm [thread:$0]  %s2697_s23, 1536, %s2699_s26, [#allocation4], %s2970_s18, %s2970_s18, %s2971_s5  }
 0x556   :  { %2957 = dma.done.wait [#allocation4], 1536  }
 0x557   :  { %2958 = vsyncadd [#allocation4], 4294965760 }
 0x558   :  { %2709 = vsyncpa [#allocation3], 1 }
 0x559   :  { %2710 = vsyncpa [#allocation4], 1 }

</bundles_post_ra>
